<compile_context>
chip_gen: v7x
topology: tpu7x:2x2x1
jax: 0.10.0
libtpu: 0.0.40
codegen_flags: <defaults>
</compile_context>

<pallas_src>
import math
import numpy as np
import jax
import jax.numpy as jnp
from jax import lax
from jax.experimental import pallas as pl
from jax.experimental.pallas import tpu as pltpu


def _gelu_exact(x):
    # nn.GELU() default (approximate='none')
    return 0.5 * x * (1.0 + lax.erf(x * (1.0 / math.sqrt(2.0))))


def _threshold_layer(xv, gamma, beta, thr_vec, alpha):
    # ImprovedEmergentThresholdLayer, eval mode (all math in f32).
    mu = jnp.mean(xv, axis=-1, keepdims=True)
    var = jnp.mean((xv - mu) ** 2, axis=-1, keepdims=True)
    xn = (xv - mu) * lax.rsqrt(var + 1e-5) * gamma + beta      # LayerNorm
    gate = jax.nn.sigmoid(jnp.abs(xn) - thr_vec)
    return jnp.clip(alpha * (gate * xv) + (1.0 - alpha) * xv, -100.0, 100.0)


def _make_kernel(n_heads):
    def kernel(xq_ref, xf_ref,
               wq_ref, wk_ref, wv_ref, wo_ref,
               bq_ref, bk_ref, bv_ref, bo_ref,
               w1_ref, b1_ref, w2_ref, b2_ref,
               g1_ref, be1_ref, thr1_ref,
               gff_ref, beff_ref, thrff_ref,
               g2_ref, be2_ref, thr2_ref,
               scal_ref, sthr_ref,
               out_ref):
        t_idx = pl.program_id(1)

        xq = xq_ref[0]                       # (TILE_T, E) f32 (residual path)
        xf = xf_ref[0]                       # (T, E) bf16 (K/V path)
        tile_t, E = xq.shape
        T = xf.shape[0]
        hd = E // n_heads

        attn_scale = scal_ref[0]
        alpha1 = scal_ref[1]
        alpha2 = scal_ref[2]
        alpha_ff = scal_ref[3]

        xq_b = xq.astype(jnp.bfloat16)

        # --- attention projections (bf16 MXU, f32 accumulate) ---
        q = jnp.dot(xq_b, wq_ref[...], preferred_element_type=jnp.float32) + bq_ref[...]
        k = jnp.dot(xf, wk_ref[...], preferred_element_type=jnp.float32) + bk_ref[...]
        v = jnp.dot(xf, wv_ref[...], preferred_element_type=jnp.float32) + bv_ref[...]

        # causal mask for this query tile against all T keys
        row = t_idx * tile_t + lax.broadcasted_iota(jnp.int32, (tile_t, T), 0)
        col = lax.broadcasted_iota(jnp.int32, (tile_t, T), 1)
        causal = col > row                   # True strictly above the diagonal

        # --- per-head thresholded causal attention ---
        head_outs = []
        for h in range(n_heads):
            qh = q[:, h * hd:(h + 1) * hd].astype(jnp.bfloat16)
            kh = k[:, h * hd:(h + 1) * hd].astype(jnp.bfloat16)
            vh = v[:, h * hd:(h + 1) * hd].astype(jnp.bfloat16)
            # q @ k^T without materializing kh.T (contract last dims of both)
            s = lax.dot_general(qh, kh, (((1,), (1,)), ((), ())),
                                preferred_element_type=jnp.float32) * attn_scale
            thr_h = sthr_ref[h]
            # fused causal + score-threshold masking (finite fill values)
            s = jnp.where(causal, -1e30, jnp.where(s < thr_h, -10000.0, s))
            m = jnp.max(s, axis=-1, keepdims=True)
            p = jnp.exp(s - m)
            denom = jnp.sum(p, axis=-1, keepdims=True)
            p = p * pl.reciprocal(denom, approx=True)
            head_outs.append(
                lax.dot_general(p.astype(jnp.bfloat16), vh,
                                (((1,), (0,)), ((), ())),
                                preferred_element_type=jnp.float32))

        attn_cat = jnp.concatenate(head_outs, axis=-1)          # (TILE_T, E) f32
        attn_out = (jnp.dot(attn_cat.astype(jnp.bfloat16), wo_ref[...],
                            preferred_element_type=jnp.float32) + bo_ref[...])

        # --- residual 1 + threshold1 ---
        x1 = xq + _threshold_layer(attn_out, g1_ref[...], be1_ref[...],
                                   thr1_ref[...], alpha1)

        # --- feed-forward: Linear -> threshold -> GELU -> Linear ---
        h1 = (jnp.dot(x1.astype(jnp.bfloat16), w1_ref[...],
                      preferred_element_type=jnp.float32) + b1_ref[...])
        h1 = _threshold_layer(h1, gff_ref[...], beff_ref[...], thrff_ref[...], alpha_ff)
        h1 = _gelu_exact(h1)
        ff = (jnp.dot(h1.astype(jnp.bfloat16), w2_ref[...],
                      preferred_element_type=jnp.float32) + b2_ref[...])

        # --- residual 2 + threshold2 ---
        x2 = x1 + _threshold_layer(ff, g2_ref[...], be2_ref[...],
                                   thr2_ref[...], alpha2)
        out_ref[0] = x2.astype(out_ref.dtype)

    return kernel


def _pick_tile(T, max_tile=256):
    if T <= max_tile:
        return T
    for cand in (256, 128, 64, 32, 16, 8):
        if T % cand == 0:
            return cand
    return T


def transformer_block_forward(x, p, n_heads):
    B, T, E = x.shape
    H4 = 4 * E
    assert E % n_heads == 0
    tile_t = _pick_tile(T)
    assert T % tile_t == 0
    sig = jax.nn.sigmoid

    # --- parameter setup glue (plain JAX) ---
    alpha1 = sig(p["ad1"][0])
    alpha2 = sig(p["ad2"][0])
    alpha_ff = sig(p["adff"][0])
    scalars = jnp.stack([p["attn_scale"][0], alpha1, alpha2, alpha_ff]).astype(jnp.float32)
    score_thr = (sig(p["score_threshold"][0])
                 * jnp.sqrt(jnp.maximum(p["score_running_var"], 1e-6))).astype(jnp.float32)

    def thr_vec(adapt, running_var):
        return (sig(adapt[0]) * jnp.sqrt(jnp.maximum(running_var, 1e-6))).reshape(1, -1)

    thr1 = thr_vec(p["ad1"], p["rv1"])
    thr2 = thr_vec(p["ad2"], p["rv2"])
    thrff = thr_vec(p["adff"], p["rvff"])

    r1 = lambda a: a.reshape(1, -1).astype(jnp.float32)  # (1, feat) f32 vectors
    wbf = lambda w: w.astype(jnp.bfloat16)                # bf16 MXU weights
    x_kv = x.astype(jnp.bfloat16)                         # bf16 copy for K/V path

    inputs = (
        x, x_kv,
        wbf(p["wq"]), wbf(p["wk"]), wbf(p["wv"]), wbf(p["wo"]),
        r1(p["bq"]), r1(p["bk"]), r1(p["bv"]), r1(p["bo"]),
        wbf(p["w1"]), r1(p["b1"]), wbf(p["w2"]), r1(p["b2"]),
        r1(p["g1"]), r1(p["be1"]), thr1,
        r1(p["gff"]), r1(p["beff"]), thrff,
        r1(p["g2"]), r1(p["be2"]), thr2,
        scalars, score_thr,
    )

    const2d = lambda shp: pl.BlockSpec(shp, lambda b, t: (0, 0))
    in_specs = [
        pl.BlockSpec((1, tile_t, E), lambda b, t: (b, t, 0)),      # x query tile (f32)
        pl.BlockSpec((1, T, E), lambda b, t: (b, 0, 0)),           # x full seq (bf16)
        const2d((E, E)), const2d((E, E)), const2d((E, E)), const2d((E, E)),  # wq..wo
        const2d((1, E)), const2d((1, E)), const2d((1, E)), const2d((1, E)),  # bq..bo
        const2d((E, H4)), const2d((1, H4)), const2d((H4, E)), const2d((1, E)),  # ff
        const2d((1, E)), const2d((1, E)), const2d((1, E)),         # g1, be1, thr1
        const2d((1, H4)), const2d((1, H4)), const2d((1, H4)),      # gff, beff, thrff
        const2d((1, E)), const2d((1, E)), const2d((1, E)),         # g2, be2, thr2
        pl.BlockSpec(memory_space=pltpu.MemorySpace.SMEM),         # scalars
        pl.BlockSpec(memory_space=pltpu.MemorySpace.SMEM),         # per-head score thr
    ]

    # Explicit scoped-VMEM budget: bf16 weights (double-buffered) + tiles + headroom.
    est = (2 * 12 * E * E * 2            # bf16 weights, double-buffered
           + 2 * T * E * 2               # full-seq bf16 x
           + 2 * 2 * tile_t * E * 4      # query tile + output tile (f32)
           + 4 * tile_t * H4 * 4         # FF intermediate / spill headroom
           + 2 * 1024 * 1024)            # misc headroom
    vmem_limit = int(min(max(est, 32 * 1024 * 1024), 64 * 1024 * 1024))

    return pl.pallas_call(
        _make_kernel(n_heads),
        out_shape=jax.ShapeDtypeStruct((B, T, E), jnp.float32),
        grid_spec=pltpu.PrefetchScalarGridSpec(
            num_scalar_prefetch=0,
            grid=(B, T // tile_t),
            in_specs=in_specs,
            out_specs=pl.BlockSpec((1, tile_t, E), lambda b, t: (b, t, 0)),
        ),
        compiler_params=pltpu.CompilerParams(
            dimension_semantics=("parallel", "parallel"),
            vmem_limit_bytes=vmem_limit),
    )(*inputs)


def reference_forward(x, p, n_heads):
    """Pure-JAX f32 reference mirroring the PyTorch eval-mode forward."""
    B, T, E = x.shape
    hd = E // n_heads
    sig = jax.nn.sigmoid

    q = x @ p["wq"] + p["bq"]
    k = x @ p["wk"] + p["bk"]
    v = x @ p["wv"] + p["bv"]
    split = lambda t: t.reshape(B, T, n_heads, hd).transpose(0, 2, 1, 3)
    q, k, v = split(q), split(k), split(v)

    scores = jnp.einsum("bhtd,bhsd->bhts", q, k) * p["attn_scale"][0]
    causal = jnp.triu(jnp.ones((T, T), bool), k=1)
    scores = jnp.where(causal[None, None], -jnp.inf, scores)
    thr = sig(p["score_threshold"][0]) * jnp.sqrt(jnp.maximum(p["score_running_var"], 1e-6))
    below = (~jnp.isinf(scores)) & (scores < thr[None, :, None, None])
    scores = jnp.where(below, -10000.0, scores)
    attn = jax.nn.softmax(scores, axis=-1)
    out = jnp.einsum("bhts,bhsd->bhtd", attn, v).transpose(0, 2, 1, 3).reshape(B, T, E)
    attn_out = out @ p["wo"] + p["bo"]

    def thr_layer(xv, gamma, beta, running_var, adapt):
        mu = xv.mean(-1, keepdims=True)
        var = ((xv - mu) ** 2).mean(-1, keepdims=True)
        xn = (xv - mu) * lax.rsqrt(var + 1e-5) * gamma + beta
        t = sig(adapt[0]) * jnp.sqrt(jnp.maximum(running_var, 1e-6))
        gate = sig(jnp.abs(xn) - t)
        alpha = sig(adapt[0])
        return jnp.clip(alpha * (gate * xv) + (1.0 - alpha) * xv, -100.0, 100.0)

    x1 = x + thr_layer(attn_out, p["g1"], p["be1"], p["rv1"], p["ad1"])
    h = x1 @ p["w1"] + p["b1"]
    h = thr_layer(h, p["gff"], p["beff"], p["rvff"], p["adff"])
    h = _gelu_exact(h)
    ff = h @ p["w2"] + p["b2"]
    return x1 + thr_layer(ff, p["g2"], p["be2"], p["rv2"], p["ad2"])


def init_params(key, E, n_heads):
    H4 = 4 * E
    hd = E // n_heads
    keys = jax.random.split(key, 12)
    n = lambda k, shp: (0.05 * jax.random.normal(k, shp)).astype(jnp.float32)
    return {
        "wq": n(keys[0], (E, E)), "bq": n(keys[1], (E,)),
        "wk": n(keys[2], (E, E)), "bk": n(keys[3], (E,)),
        "wv": n(keys[4], (E, E)), "bv": n(keys[5], (E,)),
        "wo": n(keys[6], (E, E)), "bo": n(keys[7], (E,)),
        "w1": n(keys[8], (E, H4)), "b1": n(keys[9], (H4,)),
        "w2": n(keys[10], (H4, E)), "b2": n(keys[11], (E,)),
        "attn_scale": jnp.full((1,), 1.0 / math.sqrt(hd), jnp.float32),
        "score_threshold": jnp.full((1,), 0.5, jnp.float32),
        "score_running_var": jnp.ones((n_heads,), jnp.float32),
        "g1": jnp.ones((E,), jnp.float32), "be1": jnp.zeros((E,), jnp.float32),
        "rv1": jnp.ones((E,), jnp.float32), "ad1": jnp.full((1,), 0.5, jnp.float32),
        "g2": jnp.ones((E,), jnp.float32), "be2": jnp.zeros((E,), jnp.float32),
        "rv2": jnp.ones((E,), jnp.float32), "ad2": jnp.full((1,), 0.5, jnp.float32),
        "gff": jnp.ones((H4,), jnp.float32), "beff": jnp.zeros((H4,), jnp.float32),
        "rvff": jnp.ones((H4,), jnp.float32), "adff": jnp.full((1,), 0.5, jnp.float32),
    }


if __name__ == "__main__":
    B, T, E, n_heads = 2, 8, 32, 4
    key = jax.random.PRNGKey(0)
    kx, kp = jax.random.split(key)
    x = jax.random.normal(kx, (B, T, E), jnp.float32)
    params = init_params(kp, E, n_heads)

    out = transformer_block_forward(x, params, n_heads)
    out = jax.block_until_ready(out)

    ref = jax.block_until_ready(reference_forward(x, params, n_heads))
    # bf16 MXU inputs + approximate reciprocal -> slightly looser tolerance than f32
    np.testing.assert_allclose(np.asarray(out), np.asarray(ref), rtol=2e-2, atol=2e-2)

    print("KERNEL_OK")
</pallas_src>

<mosaic_0001>
module attributes {stable_mosaic.version = 11 : i64} {
  func.func @kernel(%arg0: i32, %arg1: i32, %arg2: memref<1x8x32xf32, #tpu.memory_space<vmem>>, %arg3: memref<1x8x32xbf16, #tpu.memory_space<vmem>>, %arg4: memref<32x32xbf16, #tpu.memory_space<vmem>>, %arg5: memref<32x32xbf16, #tpu.memory_space<vmem>>, %arg6: memref<32x32xbf16, #tpu.memory_space<vmem>>, %arg7: memref<32x32xbf16, #tpu.memory_space<vmem>>, %arg8: memref<1x32xf32, #tpu.memory_space<vmem>>, %arg9: memref<1x32xf32, #tpu.memory_space<vmem>>, %arg10: memref<1x32xf32, #tpu.memory_space<vmem>>, %arg11: memref<1x32xf32, #tpu.memory_space<vmem>>, %arg12: memref<32x128xbf16, #tpu.memory_space<vmem>>, %arg13: memref<1x128xf32, #tpu.memory_space<vmem>>, %arg14: memref<128x32xbf16, #tpu.memory_space<vmem>>, %arg15: memref<1x32xf32, #tpu.memory_space<vmem>>, %arg16: memref<1x32xf32, #tpu.memory_space<vmem>>, %arg17: memref<1x32xf32, #tpu.memory_space<vmem>>, %arg18: memref<1x32xf32, #tpu.memory_space<vmem>>, %arg19: memref<1x128xf32, #tpu.memory_space<vmem>>, %arg20: memref<1x128xf32, #tpu.memory_space<vmem>>, %arg21: memref<1x128xf32, #tpu.memory_space<vmem>>, %arg22: memref<1x32xf32, #tpu.memory_space<vmem>>, %arg23: memref<1x32xf32, #tpu.memory_space<vmem>>, %arg24: memref<1x32xf32, #tpu.memory_space<vmem>>, %arg25: memref<4xf32, #tpu.memory_space<smem>>, %arg26: memref<4xf32, #tpu.memory_space<smem>>, %arg27: memref<1x8x32xf32, #tpu.memory_space<vmem>>) attributes {dimension_semantics = [#tpu.dimension_semantics<parallel>, #tpu.dimension_semantics<parallel>], iteration_bounds = array<i64: 2, 1>, scalar_prefetch = 0 : i64, scratch_operands = 0 : i64, tpu.core_type = #tpu.core_type<tc>, window_params = [{transform_indices = @transform_0, window_bounds = array<i64: 1, 8, 32>}, {transform_indices = @transform_1, window_bounds = array<i64: 1, 8, 32>}, {pipeline_mode = #tpu.pipeline_mode<synchronous>, transform_indices = @transform_2, window_bounds = array<i64: 32, 32>}, {pipeline_mode = #tpu.pipeline_mode<synchronous>, transform_indices = @transform_3, window_bounds = array<i64: 32, 32>}, {pipeline_mode = #tpu.pipeline_mode<synchronous>, transform_indices = @transform_4, window_bounds = array<i64: 32, 32>}, {pipeline_mode = #tpu.pipeline_mode<synchronous>, transform_indices = @transform_5, window_bounds = array<i64: 32, 32>}, {pipeline_mode = #tpu.pipeline_mode<synchronous>, transform_indices = @transform_6, window_bounds = array<i64: 1, 32>}, {pipeline_mode = #tpu.pipeline_mode<synchronous>, transform_indices = @transform_7, window_bounds = array<i64: 1, 32>}, {pipeline_mode = #tpu.pipeline_mode<synchronous>, transform_indices = @transform_8, window_bounds = array<i64: 1, 32>}, {pipeline_mode = #tpu.pipeline_mode<synchronous>, transform_indices = @transform_9, window_bounds = array<i64: 1, 32>}, {pipeline_mode = #tpu.pipeline_mode<synchronous>, transform_indices = @transform_10, window_bounds = array<i64: 32, 128>}, {pipeline_mode = #tpu.pipeline_mode<synchronous>, transform_indices = @transform_11, window_bounds = array<i64: 1, 128>}, {pipeline_mode = #tpu.pipeline_mode<synchronous>, transform_indices = @transform_12, window_bounds = array<i64: 128, 32>}, {pipeline_mode = #tpu.pipeline_mode<synchronous>, transform_indices = @transform_13, window_bounds = array<i64: 1, 32>}, {pipeline_mode = #tpu.pipeline_mode<synchronous>, transform_indices = @transform_14, window_bounds = array<i64: 1, 32>}, {pipeline_mode = #tpu.pipeline_mode<synchronous>, transform_indices = @transform_15, window_bounds = array<i64: 1, 32>}, {pipeline_mode = #tpu.pipeline_mode<synchronous>, transform_indices = @transform_16, window_bounds = array<i64: 1, 32>}, {pipeline_mode = #tpu.pipeline_mode<synchronous>, transform_indices = @transform_17, window_bounds = array<i64: 1, 128>}, {pipeline_mode = #tpu.pipeline_mode<synchronous>, transform_indices = @transform_18, window_bounds = array<i64: 1, 128>}, {pipeline_mode = #tpu.pipeline_mode<synchronous>, transform_indices = @transform_19, window_bounds = array<i64: 1, 128>}, {pipeline_mode = #tpu.pipeline_mode<synchronous>, transform_indices = @transform_20, window_bounds = array<i64: 1, 32>}, {pipeline_mode = #tpu.pipeline_mode<synchronous>, transform_indices = @transform_21, window_bounds = array<i64: 1, 32>}, {pipeline_mode = #tpu.pipeline_mode<synchronous>, transform_indices = @transform_22, window_bounds = array<i64: 1, 32>}, {transform_indices = @transform_23, window_bounds = array<i64: 4>}, {transform_indices = @transform_24, window_bounds = array<i64: 4>}, {transform_indices = @transform_25, window_bounds = array<i64: 1, 8, 32>}]} {
    %c0 = arith.constant 0 : index
    %c0_0 = arith.constant 0 : index
    %c0_1 = arith.constant 0 : index
    %0 = vector.load %arg2[%c0, %c0_0, %c0_1] : memref<1x8x32xf32, #tpu.memory_space<vmem>>, vector<1x8x32xf32>
    %1 = vector.shape_cast %0 : vector<1x8x32xf32> to vector<8x32xf32>
    %c0_2 = arith.constant 0 : index
    %c0_3 = arith.constant 0 : index
    %c0_4 = arith.constant 0 : index
    %2 = vector.load %arg3[%c0_2, %c0_3, %c0_4] : memref<1x8x32xbf16, #tpu.memory_space<vmem>>, vector<1x8x32xbf16>
    %3 = vector.shape_cast %2 : vector<1x8x32xbf16> to vector<8x32xbf16>
    %c0_5 = arith.constant 0 : index
    %4 = memref.load %arg25[%c0_5] : memref<4xf32, #tpu.memory_space<smem>>
    %c1 = arith.constant 1 : index
    %5 = memref.load %arg25[%c1] : memref<4xf32, #tpu.memory_space<smem>>
    %c2 = arith.constant 2 : index
    %6 = memref.load %arg25[%c2] : memref<4xf32, #tpu.memory_space<smem>>
    %c3 = arith.constant 3 : index
    %7 = memref.load %arg25[%c3] : memref<4xf32, #tpu.memory_space<smem>>
    %8 = arith.truncf %1 : vector<8x32xf32> to vector<8x32xbf16>
    %c0_6 = arith.constant 0 : index
    %c0_7 = arith.constant 0 : index
    %9 = vector.load %arg4[%c0_6, %c0_7] : memref<32x32xbf16, #tpu.memory_space<vmem>>, vector<32x32xbf16>
    %cst = arith.constant dense<0.000000e+00> : vector<8x32xf32>
    %10 = tpu.matmul %8, %9, %cst {dimension_numbers = #tpu.dot_dimension_numbers<[1], [0], [0], [1], [0, 0, 1, 1], [], []>} : vector<8x32xbf16>, vector<32x32xbf16>, vector<8x32xf32> -> vector<8x32xf32>
    %c0_8 = arith.constant 0 : index
    %c0_9 = arith.constant 0 : index
    %11 = vector.load %arg8[%c0_8, %c0_9] : memref<1x32xf32, #tpu.memory_space<vmem>>, vector<1x32xf32>
    %12 = vector.broadcast %11 : vector<1x32xf32> to vector<8x32xf32>
    %13 = arith.addf %10, %12 : vector<8x32xf32>
    %c0_10 = arith.constant 0 : index
    %c0_11 = arith.constant 0 : index
    %14 = vector.load %arg5[%c0_10, %c0_11] : memref<32x32xbf16, #tpu.memory_space<vmem>>, vector<32x32xbf16>
    %cst_12 = arith.constant dense<0.000000e+00> : vector<8x32xf32>
    %15 = tpu.matmul %3, %14, %cst_12 {dimension_numbers = #tpu.dot_dimension_numbers<[1], [0], [0], [1], [0, 0, 1, 1], [], []>} : vector<8x32xbf16>, vector<32x32xbf16>, vector<8x32xf32> -> vector<8x32xf32>
    %c0_13 = arith.constant 0 : index
    %c0_14 = arith.constant 0 : index
    %16 = vector.load %arg9[%c0_13, %c0_14] : memref<1x32xf32, #tpu.memory_space<vmem>>, vector<1x32xf32>
    %17 = vector.broadcast %16 : vector<1x32xf32> to vector<8x32xf32>
    %18 = arith.addf %15, %17 : vector<8x32xf32>
    %c0_15 = arith.constant 0 : index
    %c0_16 = arith.constant 0 : index
    %19 = vector.load %arg6[%c0_15, %c0_16] : memref<32x32xbf16, #tpu.memory_space<vmem>>, vector<32x32xbf16>
    %cst_17 = arith.constant dense<0.000000e+00> : vector<8x32xf32>
    %20 = tpu.matmul %3, %19, %cst_17 {dimension_numbers = #tpu.dot_dimension_numbers<[1], [0], [0], [1], [0, 0, 1, 1], [], []>} : vector<8x32xbf16>, vector<32x32xbf16>, vector<8x32xf32> -> vector<8x32xf32>
    %c0_18 = arith.constant 0 : index
    %c0_19 = arith.constant 0 : index
    %21 = vector.load %arg10[%c0_18, %c0_19] : memref<1x32xf32, #tpu.memory_space<vmem>>, vector<1x32xf32>
    %22 = vector.broadcast %21 : vector<1x32xf32> to vector<8x32xf32>
    %23 = arith.addf %20, %22 : vector<8x32xf32>
    %c8_i32 = arith.constant 8 : i32
    %24 = arith.muli %arg1, %c8_i32 : i32
    %25 = tpu.iota {dimensions = array<i32: 0>} : vector<8x8xi32>
    %26 = vector.broadcast %24 : i32 to vector<8x8xi32>
    %27 = arith.addi %26, %25 : vector<8x8xi32>
    %28 = tpu.iota {dimensions = array<i32: 1>} : vector<8x8xi32>
    %29 = arith.cmpi sgt, %28, %27 : vector<8x8xi32>
    %30 = vector.extract_strided_slice %13 {offsets = [0, 0], sizes = [8, 8], strides = [1, 1]} : vector<8x32xf32> to vector<8x8xf32>
    %31 = arith.truncf %30 : vector<8x8xf32> to vector<8x8xbf16>
    %32 = vector.extract_strided_slice %18 {offsets = [0, 0], sizes = [8, 8], strides = [1, 1]} : vector<8x32xf32> to vector<8x8xf32>
    %33 = arith.truncf %32 : vector<8x8xf32> to vector<8x8xbf16>
    %34 = vector.extract_strided_slice %23 {offsets = [0, 0], sizes = [8, 8], strides = [1, 1]} : vector<8x32xf32> to vector<8x8xf32>
    %35 = arith.truncf %34 : vector<8x8xf32> to vector<8x8xbf16>
    %cst_20 = arith.constant dense<0.000000e+00> : vector<8x8xf32>
    %36 = tpu.matmul %31, %33, %cst_20 {dimension_numbers = #tpu.dot_dimension_numbers<[1], [1], [0], [0], [0, 0, 1, 0], [], []>} : vector<8x8xbf16>, vector<8x8xbf16>, vector<8x8xf32> -> vector<8x8xf32>
    %37 = vector.broadcast %4 : f32 to vector<8x8xf32>
    %38 = arith.mulf %36, %37 : vector<8x8xf32>
    %c0_21 = arith.constant 0 : index
    %39 = memref.load %arg26[%c0_21] : memref<4xf32, #tpu.memory_space<smem>>
    %40 = vector.broadcast %39 : f32 to vector<8x8xf32>
    %41 = arith.cmpf olt, %38, %40 : vector<8x8xf32>
    %cst_22 = arith.constant -1.000000e+04 : f32
    %42 = vector.broadcast %cst_22 : f32 to vector<8x8xf32>
    %43 = arith.select %41, %42, %38 : vector<8x8xi1>, vector<8x8xf32>
    %cst_23 = arith.constant -1.000000e+30 : f32
    %44 = vector.broadcast %cst_23 : f32 to vector<8x8xf32>
    %45 = arith.select %29, %44, %43 : vector<8x8xi1>, vector<8x8xf32>
    %cst_24 = arith.constant dense<0xFF800000> : vector<8xf32>
    %46 = vector.multi_reduction <maximumf>, %45, %cst_24 [1] : vector<8x8xf32> to vector<8xf32>
    %47 = vector.shape_cast %46 : vector<8xf32> to vector<8x1xf32>
    %48 = vector.broadcast %47 : vector<8x1xf32> to vector<8x8xf32>
    %49 = arith.subf %45, %48 : vector<8x8xf32>
    %50 = math.exp %49 : vector<8x8xf32>
    %cst_25 = arith.constant dense<0.000000e+00> : vector<8xf32>
    %51 = vector.multi_reduction <add>, %50, %cst_25 [1] : vector<8x8xf32> to vector<8xf32>
    %52 = vector.shape_cast %51 : vector<8xf32> to vector<8x1xf32>
    %53 = tpu.reciprocal %52 {approx = true} : vector<8x1xf32> -> vector<8x1xf32>
    %54 = vector.broadcast %53 : vector<8x1xf32> to vector<8x8xf32>
    %55 = arith.mulf %50, %54 : vector<8x8xf32>
    %56 = arith.truncf %55 : vector<8x8xf32> to vector<8x8xbf16>
    %cst_26 = arith.constant dense<0.000000e+00> : vector<8x8xf32>
    %57 = tpu.matmul %56, %35, %cst_26 {dimension_numbers = #tpu.dot_dimension_numbers<[1], [0], [0], [1], [0, 0, 1, 1], [], []>} : vector<8x8xbf16>, vector<8x8xbf16>, vector<8x8xf32> -> vector<8x8xf32>
    %58 = vector.extract_strided_slice %13 {offsets = [0, 8], sizes = [8, 8], strides = [1, 1]} : vector<8x32xf32> to vector<8x8xf32>
    %59 = arith.truncf %58 : vector<8x8xf32> to vector<8x8xbf16>
    %60 = vector.extract_strided_slice %18 {offsets = [0, 8], sizes = [8, 8], strides = [1, 1]} : vector<8x32xf32> to vector<8x8xf32>
    %61 = arith.truncf %60 : vector<8x8xf32> to vector<8x8xbf16>
    %62 = vector.extract_strided_slice %23 {offsets = [0, 8], sizes = [8, 8], strides = [1, 1]} : vector<8x32xf32> to vector<8x8xf32>
    %63 = arith.truncf %62 : vector<8x8xf32> to vector<8x8xbf16>
    %cst_27 = arith.constant dense<0.000000e+00> : vector<8x8xf32>
    %64 = tpu.matmul %59, %61, %cst_27 {dimension_numbers = #tpu.dot_dimension_numbers<[1], [1], [0], [0], [0, 0, 1, 0], [], []>} : vector<8x8xbf16>, vector<8x8xbf16>, vector<8x8xf32> -> vector<8x8xf32>
    %65 = vector.broadcast %4 : f32 to vector<8x8xf32>
    %66 = arith.mulf %64, %65 : vector<8x8xf32>
    %c1_28 = arith.constant 1 : index
    %67 = memref.load %arg26[%c1_28] : memref<4xf32, #tpu.memory_space<smem>>
    %68 = vector.broadcast %67 : f32 to vector<8x8xf32>
    %69 = arith.cmpf olt, %66, %68 : vector<8x8xf32>
    %cst_29 = arith.constant -1.000000e+04 : f32
    %70 = vector.broadcast %cst_29 : f32 to vector<8x8xf32>
    %71 = arith.select %69, %70, %66 : vector<8x8xi1>, vector<8x8xf32>
    %cst_30 = arith.constant -1.000000e+30 : f32
    %72 = vector.broadcast %cst_30 : f32 to vector<8x8xf32>
    %73 = arith.select %29, %72, %71 : vector<8x8xi1>, vector<8x8xf32>
    %cst_31 = arith.constant dense<0xFF800000> : vector<8xf32>
    %74 = vector.multi_reduction <maximumf>, %73, %cst_31 [1] : vector<8x8xf32> to vector<8xf32>
    %75 = vector.shape_cast %74 : vector<8xf32> to vector<8x1xf32>
    %76 = vector.broadcast %75 : vector<8x1xf32> to vector<8x8xf32>
    %77 = arith.subf %73, %76 : vector<8x8xf32>
    %78 = math.exp %77 : vector<8x8xf32>
    %cst_32 = arith.constant dense<0.000000e+00> : vector<8xf32>
    %79 = vector.multi_reduction <add>, %78, %cst_32 [1] : vector<8x8xf32> to vector<8xf32>
    %80 = vector.shape_cast %79 : vector<8xf32> to vector<8x1xf32>
    %81 = tpu.reciprocal %80 {approx = true} : vector<8x1xf32> -> vector<8x1xf32>
    %82 = vector.broadcast %81 : vector<8x1xf32> to vector<8x8xf32>
    %83 = arith.mulf %78, %82 : vector<8x8xf32>
    %84 = arith.truncf %83 : vector<8x8xf32> to vector<8x8xbf16>
    %cst_33 = arith.constant dense<0.000000e+00> : vector<8x8xf32>
    %85 = tpu.matmul %84, %63, %cst_33 {dimension_numbers = #tpu.dot_dimension_numbers<[1], [0], [0], [1], [0, 0, 1, 1], [], []>} : vector<8x8xbf16>, vector<8x8xbf16>, vector<8x8xf32> -> vector<8x8xf32>
    %86 = vector.extract_strided_slice %13 {offsets = [0, 16], sizes = [8, 8], strides = [1, 1]} : vector<8x32xf32> to vector<8x8xf32>
    %87 = arith.truncf %86 : vector<8x8xf32> to vector<8x8xbf16>
    %88 = vector.extract_strided_slice %18 {offsets = [0, 16], sizes = [8, 8], strides = [1, 1]} : vector<8x32xf32> to vector<8x8xf32>
    %89 = arith.truncf %88 : vector<8x8xf32> to vector<8x8xbf16>
    %90 = vector.extract_strided_slice %23 {offsets = [0, 16], sizes = [8, 8], strides = [1, 1]} : vector<8x32xf32> to vector<8x8xf32>
    %91 = arith.truncf %90 : vector<8x8xf32> to vector<8x8xbf16>
    %cst_34 = arith.constant dense<0.000000e+00> : vector<8x8xf32>
    %92 = tpu.matmul %87, %89, %cst_34 {dimension_numbers = #tpu.dot_dimension_numbers<[1], [1], [0], [0], [0, 0, 1, 0], [], []>} : vector<8x8xbf16>, vector<8x8xbf16>, vector<8x8xf32> -> vector<8x8xf32>
    %93 = vector.broadcast %4 : f32 to vector<8x8xf32>
    %94 = arith.mulf %92, %93 : vector<8x8xf32>
    %c2_35 = arith.constant 2 : index
    %95 = memref.load %arg26[%c2_35] : memref<4xf32, #tpu.memory_space<smem>>
    %96 = vector.broadcast %95 : f32 to vector<8x8xf32>
    %97 = arith.cmpf olt, %94, %96 : vector<8x8xf32>
    %cst_36 = arith.constant -1.000000e+04 : f32
    %98 = vector.broadcast %cst_36 : f32 to vector<8x8xf32>
    %99 = arith.select %97, %98, %94 : vector<8x8xi1>, vector<8x8xf32>
    %cst_37 = arith.constant -1.000000e+30 : f32
    %100 = vector.broadcast %cst_37 : f32 to vector<8x8xf32>
    %101 = arith.select %29, %100, %99 : vector<8x8xi1>, vector<8x8xf32>
    %cst_38 = arith.constant dense<0xFF800000> : vector<8xf32>
    %102 = vector.multi_reduction <maximumf>, %101, %cst_38 [1] : vector<8x8xf32> to vector<8xf32>
    %103 = vector.shape_cast %102 : vector<8xf32> to vector<8x1xf32>
    %104 = vector.broadcast %103 : vector<8x1xf32> to vector<8x8xf32>
    %105 = arith.subf %101, %104 : vector<8x8xf32>
    %106 = math.exp %105 : vector<8x8xf32>
    %cst_39 = arith.constant dense<0.000000e+00> : vector<8xf32>
    %107 = vector.multi_reduction <add>, %106, %cst_39 [1] : vector<8x8xf32> to vector<8xf32>
    %108 = vector.shape_cast %107 : vector<8xf32> to vector<8x1xf32>
    %109 = tpu.reciprocal %108 {approx = true} : vector<8x1xf32> -> vector<8x1xf32>
    %110 = vector.broadcast %109 : vector<8x1xf32> to vector<8x8xf32>
    %111 = arith.mulf %106, %110 : vector<8x8xf32>
    %112 = arith.truncf %111 : vector<8x8xf32> to vector<8x8xbf16>
    %cst_40 = arith.constant dense<0.000000e+00> : vector<8x8xf32>
    %113 = tpu.matmul %112, %91, %cst_40 {dimension_numbers = #tpu.dot_dimension_numbers<[1], [0], [0], [1], [0, 0, 1, 1], [], []>} : vector<8x8xbf16>, vector<8x8xbf16>, vector<8x8xf32> -> vector<8x8xf32>
    %114 = vector.extract_strided_slice %13 {offsets = [0, 24], sizes = [8, 8], strides = [1, 1]} : vector<8x32xf32> to vector<8x8xf32>
    %115 = arith.truncf %114 : vector<8x8xf32> to vector<8x8xbf16>
    %116 = vector.extract_strided_slice %18 {offsets = [0, 24], sizes = [8, 8], strides = [1, 1]} : vector<8x32xf32> to vector<8x8xf32>
    %117 = arith.truncf %116 : vector<8x8xf32> to vector<8x8xbf16>
    %118 = vector.extract_strided_slice %23 {offsets = [0, 24], sizes = [8, 8], strides = [1, 1]} : vector<8x32xf32> to vector<8x8xf32>
    %119 = arith.truncf %118 : vector<8x8xf32> to vector<8x8xbf16>
    %cst_41 = arith.constant dense<0.000000e+00> : vector<8x8xf32>
    %120 = tpu.matmul %115, %117, %cst_41 {dimension_numbers = #tpu.dot_dimension_numbers<[1], [1], [0], [0], [0, 0, 1, 0], [], []>} : vector<8x8xbf16>, vector<8x8xbf16>, vector<8x8xf32> -> vector<8x8xf32>
    %121 = vector.broadcast %4 : f32 to vector<8x8xf32>
    %122 = arith.mulf %120, %121 : vector<8x8xf32>
    %c3_42 = arith.constant 3 : index
    %123 = memref.load %arg26[%c3_42] : memref<4xf32, #tpu.memory_space<smem>>
    %124 = vector.broadcast %123 : f32 to vector<8x8xf32>
    %125 = arith.cmpf olt, %122, %124 : vector<8x8xf32>
    %cst_43 = arith.constant -1.000000e+04 : f32
    %126 = vector.broadcast %cst_43 : f32 to vector<8x8xf32>
    %127 = arith.select %125, %126, %122 : vector<8x8xi1>, vector<8x8xf32>
    %cst_44 = arith.constant -1.000000e+30 : f32
    %128 = vector.broadcast %cst_44 : f32 to vector<8x8xf32>
    %129 = arith.select %29, %128, %127 : vector<8x8xi1>, vector<8x8xf32>
    %cst_45 = arith.constant dense<0xFF800000> : vector<8xf32>
    %130 = vector.multi_reduction <maximumf>, %129, %cst_45 [1] : vector<8x8xf32> to vector<8xf32>
    %131 = vector.shape_cast %130 : vector<8xf32> to vector<8x1xf32>
    %132 = vector.broadcast %131 : vector<8x1xf32> to vector<8x8xf32>
    %133 = arith.subf %129, %132 : vector<8x8xf32>
    %134 = math.exp %133 : vector<8x8xf32>
    %cst_46 = arith.constant dense<0.000000e+00> : vector<8xf32>
    %135 = vector.multi_reduction <add>, %134, %cst_46 [1] : vector<8x8xf32> to vector<8xf32>
    %136 = vector.shape_cast %135 : vector<8xf32> to vector<8x1xf32>
    %137 = tpu.reciprocal %136 {approx = true} : vector<8x1xf32> -> vector<8x1xf32>
    %138 = vector.broadcast %137 : vector<8x1xf32> to vector<8x8xf32>
    %139 = arith.mulf %134, %138 : vector<8x8xf32>
    %140 = arith.truncf %139 : vector<8x8xf32> to vector<8x8xbf16>
    %cst_47 = arith.constant dense<0.000000e+00> : vector<8x8xf32>
    %141 = tpu.matmul %140, %119, %cst_47 {dimension_numbers = #tpu.dot_dimension_numbers<[1], [0], [0], [1], [0, 0, 1, 1], [], []>} : vector<8x8xbf16>, vector<8x8xbf16>, vector<8x8xf32> -> vector<8x8xf32>
    %142 = tpu.concatenate %57, %85, %113, %141 in 1 : vector<8x8xf32>, vector<8x8xf32>, vector<8x8xf32>, vector<8x8xf32> -> vector<8x32xf32>
    %143 = arith.truncf %142 : vector<8x32xf32> to vector<8x32xbf16>
    %c0_48 = arith.constant 0 : index
    %c0_49 = arith.constant 0 : index
    %144 = vector.load %arg7[%c0_48, %c0_49] : memref<32x32xbf16, #tpu.memory_space<vmem>>, vector<32x32xbf16>
    %cst_50 = arith.constant dense<0.000000e+00> : vector<8x32xf32>
    %145 = tpu.matmul %143, %144, %cst_50 {dimension_numbers = #tpu.dot_dimension_numbers<[1], [0], [0], [1], [0, 0, 1, 1], [], []>} : vector<8x32xbf16>, vector<32x32xbf16>, vector<8x32xf32> -> vector<8x32xf32>
    %c0_51 = arith.constant 0 : index
    %c0_52 = arith.constant 0 : index
    %146 = vector.load %arg11[%c0_51, %c0_52] : memref<1x32xf32, #tpu.memory_space<vmem>>, vector<1x32xf32>
    %147 = vector.broadcast %146 : vector<1x32xf32> to vector<8x32xf32>
    %148 = arith.addf %145, %147 : vector<8x32xf32>
    %c0_53 = arith.constant 0 : index
    %c0_54 = arith.constant 0 : index
    %149 = vector.load %arg16[%c0_53, %c0_54] : memref<1x32xf32, #tpu.memory_space<vmem>>, vector<1x32xf32>
    %c0_55 = arith.constant 0 : index
    %c0_56 = arith.constant 0 : index
    %150 = vector.load %arg17[%c0_55, %c0_56] : memref<1x32xf32, #tpu.memory_space<vmem>>, vector<1x32xf32>
    %c0_57 = arith.constant 0 : index
    %c0_58 = arith.constant 0 : index
    %151 = vector.load %arg18[%c0_57, %c0_58] : memref<1x32xf32, #tpu.memory_space<vmem>>, vector<1x32xf32>
    %cst_59 = arith.constant dense<0.000000e+00> : vector<8xf32>
    %152 = vector.multi_reduction <add>, %148, %cst_59 [1] : vector<8x32xf32> to vector<8xf32>
    %153 = vector.shape_cast %152 : vector<8xf32> to vector<8x1xf32>
    %cst_60 = arith.constant 3.200000e+01 : f32
    %154 = vector.broadcast %cst_60 : f32 to vector<8x1xf32>
    %155 = arith.divf %153, %154 : vector<8x1xf32>
    %156 = vector.broadcast %155 : vector<8x1xf32> to vector<8x32xf32>
    %157 = arith.subf %148, %156 : vector<8x32xf32>
    %158 = arith.mulf %157, %157 : vector<8x32xf32>
    %cst_61 = arith.constant dense<0.000000e+00> : vector<8xf32>
    %159 = vector.multi_reduction <add>, %158, %cst_61 [1] : vector<8x32xf32> to vector<8xf32>
    %160 = vector.shape_cast %159 : vector<8xf32> to vector<8x1xf32>
    %cst_62 = arith.constant 3.200000e+01 : f32
    %161 = vector.broadcast %cst_62 : f32 to vector<8x1xf32>
    %162 = arith.divf %160, %161 : vector<8x1xf32>
    %163 = vector.broadcast %155 : vector<8x1xf32> to vector<8x32xf32>
    %164 = arith.subf %148, %163 : vector<8x32xf32>
    %cst_63 = arith.constant 9.99999974E-6 : f32
    %165 = vector.broadcast %cst_63 : f32 to vector<8x1xf32>
    %166 = arith.addf %162, %165 : vector<8x1xf32>
    %167 = math.rsqrt %166 : vector<8x1xf32>
    %168 = vector.broadcast %167 : vector<8x1xf32> to vector<8x32xf32>
    %169 = arith.mulf %164, %168 : vector<8x32xf32>
    %170 = vector.broadcast %149 : vector<1x32xf32> to vector<8x32xf32>
    %171 = arith.mulf %169, %170 : vector<8x32xf32>
    %172 = vector.broadcast %150 : vector<1x32xf32> to vector<8x32xf32>
    %173 = arith.addf %171, %172 : vector<8x32xf32>
    %174 = math.absf %173 : vector<8x32xf32>
    %175 = vector.broadcast %151 : vector<1x32xf32> to vector<8x32xf32>
    %176 = arith.subf %174, %175 : vector<8x32xf32>
    %177 = arith.negf %176 : vector<8x32xf32>
    %178 = math.exp %177 : vector<8x32xf32>
    %cst_64 = arith.constant 1.000000e+00 : f32
    %179 = vector.broadcast %cst_64 : f32 to vector<8x32xf32>
    %180 = arith.addf %179, %178 : vector<8x32xf32>
    %181 = arith.divf %179, %180 : vector<8x32xf32>
    %182 = arith.mulf %181, %148 : vector<8x32xf32>
    %183 = vector.broadcast %5 : f32 to vector<8x32xf32>
    %184 = arith.mulf %183, %182 : vector<8x32xf32>
    %cst_65 = arith.constant 1.000000e+00 : f32
    %185 = arith.subf %cst_65, %5 : f32
    %186 = vector.broadcast %185 : f32 to vector<8x32xf32>
    %187 = arith.mulf %186, %148 : vector<8x32xf32>
    %188 = arith.addf %184, %187 : vector<8x32xf32>
    %cst_66 = arith.constant -1.000000e+02 : f32
    %cst_67 = arith.constant 1.000000e+02 : f32
    %189 = vector.broadcast %cst_66 : f32 to vector<8x32xf32>
    %190 = arith.maximumf %189, %188 : vector<8x32xf32>
    %191 = vector.broadcast %cst_67 : f32 to vector<8x32xf32>
    %192 = arith.minimumf %191, %190 : vector<8x32xf32>
    %193 = arith.addf %1, %192 : vector<8x32xf32>
    %194 = arith.truncf %193 : vector<8x32xf32> to vector<8x32xbf16>
    %c0_68 = arith.constant 0 : index
    %c0_69 = arith.constant 0 : index
    %195 = vector.load %arg12[%c0_68, %c0_69] : memref<32x128xbf16, #tpu.memory_space<vmem>>, vector<32x128xbf16>
    %cst_70 = arith.constant dense<0.000000e+00> : vector<8x128xf32>
    %196 = tpu.matmul %194, %195, %cst_70 {dimension_numbers = #tpu.dot_dimension_numbers<[1], [0], [0], [1], [0, 0, 1, 1], [], []>} : vector<8x32xbf16>, vector<32x128xbf16>, vector<8x128xf32> -> vector<8x128xf32>
    %c0_71 = arith.constant 0 : index
    %c0_72 = arith.constant 0 : index
    %197 = vector.load %arg13[%c0_71, %c0_72] : memref<1x128xf32, #tpu.memory_space<vmem>>, vector<1x128xf32>
    %198 = vector.broadcast %197 : vector<1x128xf32> to vector<8x128xf32>
    %199 = arith.addf %196, %198 : vector<8x128xf32>
    %c0_73 = arith.constant 0 : index
    %c0_74 = arith.constant 0 : index
    %200 = vector.load %arg19[%c0_73, %c0_74] : memref<1x128xf32, #tpu.memory_space<vmem>>, vector<1x128xf32>
    %c0_75 = arith.constant 0 : index
    %c0_76 = arith.constant 0 : index
    %201 = vector.load %arg20[%c0_75, %c0_76] : memref<1x128xf32, #tpu.memory_space<vmem>>, vector<1x128xf32>
    %c0_77 = arith.constant 0 : index
    %c0_78 = arith.constant 0 : index
    %202 = vector.load %arg21[%c0_77, %c0_78] : memref<1x128xf32, #tpu.memory_space<vmem>>, vector<1x128xf32>
    %cst_79 = arith.constant dense<0.000000e+00> : vector<8xf32>
    %203 = vector.multi_reduction <add>, %199, %cst_79 [1] : vector<8x128xf32> to vector<8xf32>
    %204 = vector.shape_cast %203 : vector<8xf32> to vector<8x1xf32>
    %cst_80 = arith.constant 1.280000e+02 : f32
    %205 = vector.broadcast %cst_80 : f32 to vector<8x1xf32>
    %206 = arith.divf %204, %205 : vector<8x1xf32>
    %207 = vector.broadcast %206 : vector<8x1xf32> to vector<8x128xf32>
    %208 = arith.subf %199, %207 : vector<8x128xf32>
    %209 = arith.mulf %208, %208 : vector<8x128xf32>
    %cst_81 = arith.constant dense<0.000000e+00> : vector<8xf32>
    %210 = vector.multi_reduction <add>, %209, %cst_81 [1] : vector<8x128xf32> to vector<8xf32>
    %211 = vector.shape_cast %210 : vector<8xf32> to vector<8x1xf32>
    %cst_82 = arith.constant 1.280000e+02 : f32
    %212 = vector.broadcast %cst_82 : f32 to vector<8x1xf32>
    %213 = arith.divf %211, %212 : vector<8x1xf32>
    %214 = vector.broadcast %206 : vector<8x1xf32> to vector<8x128xf32>
    %215 = arith.subf %199, %214 : vector<8x128xf32>
    %cst_83 = arith.constant 9.99999974E-6 : f32
    %216 = vector.broadcast %cst_83 : f32 to vector<8x1xf32>
    %217 = arith.addf %213, %216 : vector<8x1xf32>
    %218 = math.rsqrt %217 : vector<8x1xf32>
    %219 = vector.broadcast %218 : vector<8x1xf32> to vector<8x128xf32>
    %220 = arith.mulf %215, %219 : vector<8x128xf32>
    %221 = vector.broadcast %200 : vector<1x128xf32> to vector<8x128xf32>
    %222 = arith.mulf %220, %221 : vector<8x128xf32>
    %223 = vector.broadcast %201 : vector<1x128xf32> to vector<8x128xf32>
    %224 = arith.addf %222, %223 : vector<8x128xf32>
    %225 = math.absf %224 : vector<8x128xf32>
    %226 = vector.broadcast %202 : vector<1x128xf32> to vector<8x128xf32>
    %227 = arith.subf %225, %226 : vector<8x128xf32>
    %228 = arith.negf %227 : vector<8x128xf32>
    %229 = math.exp %228 : vector<8x128xf32>
    %cst_84 = arith.constant 1.000000e+00 : f32
    %230 = vector.broadcast %cst_84 : f32 to vector<8x128xf32>
    %231 = arith.addf %230, %229 : vector<8x128xf32>
    %232 = arith.divf %230, %231 : vector<8x128xf32>
    %233 = arith.mulf %232, %199 : vector<8x128xf32>
    %234 = vector.broadcast %7 : f32 to vector<8x128xf32>
    %235 = arith.mulf %234, %233 : vector<8x128xf32>
    %cst_85 = arith.constant 1.000000e+00 : f32
    %236 = arith.subf %cst_85, %7 : f32
    %237 = vector.broadcast %236 : f32 to vector<8x128xf32>
    %238 = arith.mulf %237, %199 : vector<8x128xf32>
    %239 = arith.addf %235, %238 : vector<8x128xf32>
    %cst_86 = arith.constant -1.000000e+02 : f32
    %cst_87 = arith.constant 1.000000e+02 : f32
    %240 = vector.broadcast %cst_86 : f32 to vector<8x128xf32>
    %241 = arith.maximumf %240, %239 : vector<8x128xf32>
    %242 = vector.broadcast %cst_87 : f32 to vector<8x128xf32>
    %243 = arith.minimumf %242, %241 : vector<8x128xf32>
    %cst_88 = arith.constant 5.000000e-01 : f32
    %244 = vector.broadcast %cst_88 : f32 to vector<8x128xf32>
    %245 = arith.mulf %244, %243 : vector<8x128xf32>
    %cst_89 = arith.constant 0.707106769 : f32
    %246 = vector.broadcast %cst_89 : f32 to vector<8x128xf32>
    %247 = arith.mulf %243, %246 : vector<8x128xf32>
    %248 = math.erf %247 : vector<8x128xf32>
    %cst_90 = arith.constant 1.000000e+00 : f32
    %249 = vector.broadcast %cst_90 : f32 to vector<8x128xf32>
    %250 = arith.addf %249, %248 : vector<8x128xf32>
    %251 = arith.mulf %245, %250 : vector<8x128xf32>
    %252 = arith.truncf %251 : vector<8x128xf32> to vector<8x128xbf16>
    %c0_91 = arith.constant 0 : index
    %c0_92 = arith.constant 0 : index
    %253 = vector.load %arg14[%c0_91, %c0_92] : memref<128x32xbf16, #tpu.memory_space<vmem>>, vector<128x32xbf16>
    %cst_93 = arith.constant dense<0.000000e+00> : vector<8x32xf32>
    %254 = tpu.matmul %252, %253, %cst_93 {dimension_numbers = #tpu.dot_dimension_numbers<[1], [0], [0], [1], [0, 0, 1, 1], [], []>} : vector<8x128xbf16>, vector<128x32xbf16>, vector<8x32xf32> -> vector<8x32xf32>
    %c0_94 = arith.constant 0 : index
    %c0_95 = arith.constant 0 : index
    %255 = vector.load %arg15[%c0_94, %c0_95] : memref<1x32xf32, #tpu.memory_space<vmem>>, vector<1x32xf32>
    %256 = vector.broadcast %255 : vector<1x32xf32> to vector<8x32xf32>
    %257 = arith.addf %254, %256 : vector<8x32xf32>
    %c0_96 = arith.constant 0 : index
    %c0_97 = arith.constant 0 : index
    %258 = vector.load %arg22[%c0_96, %c0_97] : memref<1x32xf32, #tpu.memory_space<vmem>>, vector<1x32xf32>
    %c0_98 = arith.constant 0 : index
    %c0_99 = arith.constant 0 : index
    %259 = vector.load %arg23[%c0_98, %c0_99] : memref<1x32xf32, #tpu.memory_space<vmem>>, vector<1x32xf32>
    %c0_100 = arith.constant 0 : index
    %c0_101 = arith.constant 0 : index
    %260 = vector.load %arg24[%c0_100, %c0_101] : memref<1x32xf32, #tpu.memory_space<vmem>>, vector<1x32xf32>
    %cst_102 = arith.constant dense<0.000000e+00> : vector<8xf32>
    %261 = vector.multi_reduction <add>, %257, %cst_102 [1] : vector<8x32xf32> to vector<8xf32>
    %262 = vector.shape_cast %261 : vector<8xf32> to vector<8x1xf32>
    %cst_103 = arith.constant 3.200000e+01 : f32
    %263 = vector.broadcast %cst_103 : f32 to vector<8x1xf32>
    %264 = arith.divf %262, %263 : vector<8x1xf32>
    %265 = vector.broadcast %264 : vector<8x1xf32> to vector<8x32xf32>
    %266 = arith.subf %257, %265 : vector<8x32xf32>
    %267 = arith.mulf %266, %266 : vector<8x32xf32>
    %cst_104 = arith.constant dense<0.000000e+00> : vector<8xf32>
    %268 = vector.multi_reduction <add>, %267, %cst_104 [1] : vector<8x32xf32> to vector<8xf32>
    %269 = vector.shape_cast %268 : vector<8xf32> to vector<8x1xf32>
    %cst_105 = arith.constant 3.200000e+01 : f32
    %270 = vector.broadcast %cst_105 : f32 to vector<8x1xf32>
    %271 = arith.divf %269, %270 : vector<8x1xf32>
    %272 = vector.broadcast %264 : vector<8x1xf32> to vector<8x32xf32>
    %273 = arith.subf %257, %272 : vector<8x32xf32>
    %cst_106 = arith.constant 9.99999974E-6 : f32
    %274 = vector.broadcast %cst_106 : f32 to vector<8x1xf32>
    %275 = arith.addf %271, %274 : vector<8x1xf32>
    %276 = math.rsqrt %275 : vector<8x1xf32>
    %277 = vector.broadcast %276 : vector<8x1xf32> to vector<8x32xf32>
    %278 = arith.mulf %273, %277 : vector<8x32xf32>
    %279 = vector.broadcast %258 : vector<1x32xf32> to vector<8x32xf32>
    %280 = arith.mulf %278, %279 : vector<8x32xf32>
    %281 = vector.broadcast %259 : vector<1x32xf32> to vector<8x32xf32>
    %282 = arith.addf %280, %281 : vector<8x32xf32>
    %283 = math.absf %282 : vector<8x32xf32>
    %284 = vector.broadcast %260 : vector<1x32xf32> to vector<8x32xf32>
    %285 = arith.subf %283, %284 : vector<8x32xf32>
    %286 = arith.negf %285 : vector<8x32xf32>
    %287 = math.exp %286 : vector<8x32xf32>
    %cst_107 = arith.constant 1.000000e+00 : f32
    %288 = vector.broadcast %cst_107 : f32 to vector<8x32xf32>
    %289 = arith.addf %288, %287 : vector<8x32xf32>
    %290 = arith.divf %288, %289 : vector<8x32xf32>
    %291 = arith.mulf %290, %257 : vector<8x32xf32>
    %292 = vector.broadcast %6 : f32 to vector<8x32xf32>
    %293 = arith.mulf %292, %291 : vector<8x32xf32>
    %cst_108 = arith.constant 1.000000e+00 : f32
    %294 = arith.subf %cst_108, %6 : f32
    %295 = vector.broadcast %294 : f32 to vector<8x32xf32>
    %296 = arith.mulf %295, %257 : vector<8x32xf32>
    %297 = arith.addf %293, %296 : vector<8x32xf32>
    %cst_109 = arith.constant -1.000000e+02 : f32
    %cst_110 = arith.constant 1.000000e+02 : f32
    %298 = vector.broadcast %cst_109 : f32 to vector<8x32xf32>
    %299 = arith.maximumf %298, %297 : vector<8x32xf32>
    %300 = vector.broadcast %cst_110 : f32 to vector<8x32xf32>
    %301 = arith.minimumf %300, %299 : vector<8x32xf32>
    %302 = arith.addf %193, %301 : vector<8x32xf32>
    %c0_111 = arith.constant 0 : index
    %c0_112 = arith.constant 0 : index
    %c0_113 = arith.constant 0 : index
    %303 = vector.load %arg27[%c0_111, %c0_112, %c0_113] : memref<1x8x32xf32, #tpu.memory_space<vmem>>, vector<1x8x32xf32>
    %304 = vector.shape_cast %303 : vector<1x8x32xf32> to vector<8x32xf32>
    %305 = vector.shape_cast %302 : vector<8x32xf32> to vector<1x8x32xf32>
    tpu.vector_store %arg27[%c0_111, %c0_112, %c0_113], %305 {strides = array<i32>} : memref<1x8x32xf32, #tpu.memory_space<vmem>>, vector<1x8x32xf32>,
    return
  }
  func.func @transform_0(%arg0: i32, %arg1: i32) -> (i32, i32, i32) {
    %c0_i32 = arith.constant 0 : i32
    %c0_i32_0 = arith.constant 0 : i32
    return %arg0, %arg1, %c0_i32 : i32, i32, i32
  }
  func.func @transform_1(%arg0: i32, %arg1: i32) -> (i32, i32, i32) {
    %c0_i32 = arith.constant 0 : i32
    %c0_i32_0 = arith.constant 0 : i32
    %c0_i32_1 = arith.constant 0 : i32
    return %arg0, %c0_i32, %c0_i32_0 : i32, i32, i32
  }
  func.func @transform_2(%arg0: i32, %arg1: i32) -> (i32, i32) {
    %c0_i32 = arith.constant 0 : i32
    %c0_i32_0 = arith.constant 0 : i32
    %c0_i32_1 = arith.constant 0 : i32
    return %c0_i32, %c0_i32_0 : i32, i32
  }
  func.func @transform_3(%arg0: i32, %arg1: i32) -> (i32, i32) {
    %c0_i32 = arith.constant 0 : i32
    %c0_i32_0 = arith.constant 0 : i32
    %c0_i32_1 = arith.constant 0 : i32
    return %c0_i32, %c0_i32_0 : i32, i32
  }
  func.func @transform_4(%arg0: i32, %arg1: i32) -> (i32, i32) {
    %c0_i32 = arith.constant 0 : i32
    %c0_i32_0 = arith.constant 0 : i32
    %c0_i32_1 = arith.constant 0 : i32
    return %c0_i32, %c0_i32_0 : i32, i32
  }
  func.func @transform_5(%arg0: i32, %arg1: i32) -> (i32, i32) {
    %c0_i32 = arith.constant 0 : i32
    %c0_i32_0 = arith.constant 0 : i32
    %c0_i32_1 = arith.constant 0 : i32
    return %c0_i32, %c0_i32_0 : i32, i32
  }
  func.func @transform_6(%arg0: i32, %arg1: i32) -> (i32, i32) {
    %c0_i32 = arith.constant 0 : i32
    %c0_i32_0 = arith.constant 0 : i32
    %c0_i32_1 = arith.constant 0 : i32
    return %c0_i32, %c0_i32_0 : i32, i32
  }
  func.func @transform_7(%arg0: i32, %arg1: i32) -> (i32, i32) {
    %c0_i32 = arith.constant 0 : i32
    %c0_i32_0 = arith.constant 0 : i32
    %c0_i32_1 = arith.constant 0 : i32
    return %c0_i32, %c0_i32_0 : i32, i32
  }
  func.func @transform_8(%arg0: i32, %arg1: i32) -> (i32, i32) {
    %c0_i32 = arith.constant 0 : i32
    %c0_i32_0 = arith.constant 0 : i32
    %c0_i32_1 = arith.constant 0 : i32
    return %c0_i32, %c0_i32_0 : i32, i32
  }
  func.func @transform_9(%arg0: i32, %arg1: i32) -> (i32, i32) {
    %c0_i32 = arith.constant 0 : i32
    %c0_i32_0 = arith.constant 0 : i32
    %c0_i32_1 = arith.constant 0 : i32
    return %c0_i32, %c0_i32_0 : i32, i32
  }
  func.func @transform_10(%arg0: i32, %arg1: i32) -> (i32, i32) {
    %c0_i32 = arith.constant 0 : i32
    %c0_i32_0 = arith.constant 0 : i32
    %c0_i32_1 = arith.constant 0 : i32
    return %c0_i32, %c0_i32_0 : i32, i32
  }
  func.func @transform_11(%arg0: i32, %arg1: i32) -> (i32, i32) {
    %c0_i32 = arith.constant 0 : i32
    %c0_i32_0 = arith.constant 0 : i32
    %c0_i32_1 = arith.constant 0 : i32
    return %c0_i32, %c0_i32_0 : i32, i32
  }
  func.func @transform_12(%arg0: i32, %arg1: i32) -> (i32, i32) {
    %c0_i32 = arith.constant 0 : i32
    %c0_i32_0 = arith.constant 0 : i32
    %c0_i32_1 = arith.constant 0 : i32
    return %c0_i32, %c0_i32_0 : i32, i32
  }
  func.func @transform_13(%arg0: i32, %arg1: i32) -> (i32, i32) {
    %c0_i32 = arith.constant 0 : i32
    %c0_i32_0 = arith.constant 0 : i32
    %c0_i32_1 = arith.constant 0 : i32
    return %c0_i32, %c0_i32_0 : i32, i32
  }
  func.func @transform_14(%arg0: i32, %arg1: i32) -> (i32, i32) {
    %c0_i32 = arith.constant 0 : i32
    %c0_i32_0 = arith.constant 0 : i32
    %c0_i32_1 = arith.constant 0 : i32
    return %c0_i32, %c0_i32_0 : i32, i32
  }
  func.func @transform_15(%arg0: i32, %arg1: i32) -> (i32, i32) {
    %c0_i32 = arith.constant 0 : i32
    %c0_i32_0 = arith.constant 0 : i32
    %c0_i32_1 = arith.constant 0 : i32
    return %c0_i32, %c0_i32_0 : i32, i32
  }
  func.func @transform_16(%arg0: i32, %arg1: i32) -> (i32, i32) {
    %c0_i32 = arith.constant 0 : i32
    %c0_i32_0 = arith.constant 0 : i32
    %c0_i32_1 = arith.constant 0 : i32
    return %c0_i32, %c0_i32_0 : i32, i32
  }
  func.func @transform_17(%arg0: i32, %arg1: i32) -> (i32, i32) {
    %c0_i32 = arith.constant 0 : i32
    %c0_i32_0 = arith.constant 0 : i32
    %c0_i32_1 = arith.constant 0 : i32
    return %c0_i32, %c0_i32_0 : i32, i32
  }
  func.func @transform_18(%arg0: i32, %arg1: i32) -> (i32, i32) {
    %c0_i32 = arith.constant 0 : i32
    %c0_i32_0 = arith.constant 0 : i32
    %c0_i32_1 = arith.constant 0 : i32
    return %c0_i32, %c0_i32_0 : i32, i32
  }
  func.func @transform_19(%arg0: i32, %arg1: i32) -> (i32, i32) {
    %c0_i32 = arith.constant 0 : i32
    %c0_i32_0 = arith.constant 0 : i32
    %c0_i32_1 = arith.constant 0 : i32
    return %c0_i32, %c0_i32_0 : i32, i32
  }
  func.func @transform_20(%arg0: i32, %arg1: i32) -> (i32, i32) {
    %c0_i32 = arith.constant 0 : i32
    %c0_i32_0 = arith.constant 0 : i32
    %c0_i32_1 = arith.constant 0 : i32
    return %c0_i32, %c0_i32_0 : i32, i32
  }
  func.func @transform_21(%arg0: i32, %arg1: i32) -> (i32, i32) {
    %c0_i32 = arith.constant 0 : i32
    %c0_i32_0 = arith.constant 0 : i32
    %c0_i32_1 = arith.constant 0 : i32
    return %c0_i32, %c0_i32_0 : i32, i32
  }
  func.func @transform_22(%arg0: i32, %arg1: i32) -> (i32, i32) {
    %c0_i32 = arith.constant 0 : i32
    %c0_i32_0 = arith.constant 0 : i32
    %c0_i32_1 = arith.constant 0 : i32
    return %c0_i32, %c0_i32_0 : i32, i32
  }
  func.func @transform_23(%arg0: i32, %arg1: i32) -> i32 {
    %c0_i32 = arith.constant 0 : i32
    %c0_i32_0 = arith.constant 0 : i32
    return %c0_i32 : i32
  }
  func.func @transform_24(%arg0: i32, %arg1: i32) -> i32 {
    %c0_i32 = arith.constant 0 : i32
    %c0_i32_0 = arith.constant 0 : i32
    return %c0_i32 : i32
  }
  func.func @transform_25(%arg0: i32, %arg1: i32) -> (i32, i32, i32) {
    %c0_i32 = arith.constant 0 : i32
    %c0_i32_0 = arith.constant 0 : i32
    return %arg0, %arg1, %c0_i32 : i32, i32, i32
  }
}

</mosaic_0001>

<bundles_post_ra>
// kernel: tpu_custom_call.1
= control target key start
LH: loop header
LB: loop body
LE: loop exit
PB: predicated region body
PF: predicated region fallthrough
CT: control target
= control target key end

     0   :  { %s3381_s0 = inlined_call_operand.vmem [shape: f32[2,8,32], index: 0, kind: input, shape index: {}]   ;;  %s3382_s1 = inlined_call_operand.hbm [shape: bf16[2,8,32], index: 1, kind: input, shape index: {}]   ;;  %s3383_s2 = inlined_call_operand.vmem [shape: bf16[32,32], index: 2, kind: input, shape index: {}]   ;;  %s3384_s3 = inlined_call_operand.vmem [shape: bf16[32,32], index: 3, kind: input, shape index: {}]   ;;  %s3385_s4 = inlined_call_operand.vmem [shape: bf16[32,32], index: 4, kind: input, shape index: {}]   ;;  %s3386_s5 = inlined_call_operand.vmem [shape: bf16[32,32], index: 5, kind: input, shape index: {}]   ;;  %s3387_s6 = inlined_call_operand.vmem [shape: f32[1,32], index: 6, kind: input, shape index: {}]   ;;  %s3388_s7 = inlined_call_operand.vmem [shape: f32[1,32], index: 7, kind: input, shape index: {}]   ;;  %s3389_s8 = inlined_call_operand.hbm [shape: f32[1,32], index: 8, kind: input, shape index: {}]   ;;  %s3390_s9 = inlined_call_operand.hbm [shape: f32[1,32], index: 9, kind: input, shape index: {}]   ;;  %s3391_s10 = inlined_call_operand.vmem [shape: bf16[32,128], index: 10, kind: input, shape index: {}]   ;;  %s3392_s11 = inlined_call_operand.vmem [shape: f32[1,128], index: 11, kind: input, shape index: {}]   ;;  %s3393_s12 = inlined_call_operand.vmem [shape: bf16[128,32], index: 12, kind: input, shape index: {}]   ;;  %s3394_s13 = inlined_call_operand.vmem [shape: f32[1,32], index: 13, kind: input, shape index: {}]   ;;  %s3395_s14 = inlined_call_operand.vmem [shape: f32[1,32], index: 14, kind: input, shape index: {}]   ;;  %s3396_s15 = inlined_call_operand.vmem [shape: f32[1,32], index: 15, kind: input, shape index: {}]   ;;  %s3397_s16 = inlined_call_operand.vmem [shape: f32[1,32], index: 16, kind: input, shape index: {}]   ;;  %s3398_s17 = inlined_call_operand.vmem [shape: f32[1,128], index: 17, kind: input, shape index: {}]   ;;  %s3399_s18 = inlined_call_operand.vmem [shape: f32[1,128], index: 18, kind: input, shape index: {}]   ;;  %s3400_s19 = inlined_call_operand.vmem [shape: f32[1,128], index: 19, kind: input, shape index: {}]   ;;  %s3401_s20 = inlined_call_operand.vmem [shape: f32[1,32], index: 20, kind: input, shape index: {}]   ;;  %s3402_s21 = inlined_call_operand.vmem [shape: f32[1,32], index: 21, kind: input, shape index: {}]   ;;  %s3403_s22 = inlined_call_operand.vmem [shape: f32[1,32], index: 22, kind: input, shape index: {}]   ;;  %s3404_s23 = inlined_call_operand.vmem [shape: f32[4], index: 23, kind: input, shape index: {}]   ;;  %s3405_s24 = inlined_call_operand.vmem [shape: f32[4], index: 24, kind: input, shape index: {}]   ;;  %s3406_s25 = inlined_call_operand.hbm [shape: f32[2,8,32], index: 25, kind: output, shape index: {}]  }
   0x1   :  { %3424 = sst [smem:[#allocation19_spill]] %s3381_s0 }
   0x2   :  { %3425 = sst [smem:[#allocation20_spill]] %s3382_s1 }
   0x3   :  { %3426 = sst [smem:[#allocation21_spill]] %s3383_s2 }
   0x4   :  { %3427 = sst [smem:[#allocation22_spill]] %s3384_s3 }
   0x5   :  { %3428 = sst [smem:[#allocation23_spill]] %s3385_s4 }
   0x6   :  { %3429 = sst [smem:[#allocation24_spill]] %s3386_s5 }
   0x7   :  { %3430 = sst [smem:[#allocation25_spill]] %s3387_s6 }
   0x8   :  { %3431 = sst [smem:[#allocation26_spill]] %s3388_s7 }
   0x9   :  { %3432 = sst [smem:[#allocation27_spill]] %s3389_s8 }
   0xa   :  { %3433 = sst [smem:[#allocation28_spill]] %s3390_s9 }
   0xb   :  { %3434 = sst [smem:[#allocation29_spill]] %s3394_s13 }
   0xc   :  { %3435 = sst [smem:[#allocation30_spill]] %s3398_s17 }
   0xd   :  { %3436 = sst [smem:[#allocation31_spill]] %s3399_s18 }
   0xe   :  { %3437 = sst [smem:[#allocation32_spill]] %s3400_s19 }
   0xf   :  { %3438 = sst [smem:[#allocation33_spill]] %s3401_s20 }
  0x10   :  { %3439 = sst [smem:[#allocation34_spill]] %s3402_s21 }
  0x11   :  { %3440 = sst [smem:[#allocation35_spill]] %s3403_s22 }
  0x12   :  { %3441 = sst [smem:[#allocation36_spill]] %s3404_s23 }
  0x13   :  { %3442 = sst [smem:[#allocation37_spill]] %s3405_s24 }
  0x14   :  { %3443 = sst [smem:[#allocation38_spill]] %s3406_s25 }
  0x15   :  { %30 = vsyncpa [#allocation3], 0 }
  0x16   :  { %32 = vsyncpa [#allocation3 + $0x1], 0 }
  0x17   :  { %33 = vsyncpa [#allocation7], 0 }
  0x18   :  { %34 = vsyncpa [#allocation5], 0 }
  0x19   :  { %35 = vsyncpa [#allocation11], 0 }
  0x1a   :  { %36 = vsyncpa [#allocation4], 0 }
  0x1b   :  { %38 = vsyncpa [#allocation4 + $0x1], 0  ;;  %s2882_s29 = smov 0   ;;  %s2884_s2 = smov 0  }
  0x1c   :  { %s2886_s6 = smov 0   ;;  %s2888_s30 = smov 0  }
  0x1d   :  { %s2890_s7 = smov 0   ;;  %s2892_s3 = smov 0  }
  0x1e LB: > { %s3414_s26 = sadd.s32 4294967295, %s2736_s3   ;;  %p2135_p0 = scmp.ge.s32.totalorder %s2736_s3, 1  ;;  %s2736_s3 = sphi %s2892_s3, %s44_s3   ;;  %s2732_s7 = sphi %s2890_s7, %s3487_s7   ;;  %s2728_s30 = sphi %s2888_s30, %s3486_s30   ;;  %s2724_s6 = sphi %s2886_s6, %s3485_s6   ;;  %s2720_s2 = sphi %s2884_s2, %s3484_s2   ;;  %s2716_s29 = sphi %s2882_s29, %s3483_s29  }
  0x1f   : > { %p2916_p1 = scmp.eq.s32.totalorder %s3414_s26, 0  ;;  %p626_p2 = scmp.lt.s32.totalorder %s2736_s3, 3 }
  0x20   : > { %s2738_s27 = smov [#allocation6]   ;;  %s2739_s28 = smov [#allocation8]  }
  0x21   : > { %s3444_s1 = scalar_select %p2916_p1, 1, 0 }
  0x22   : > { %p2921_p3 = pnand %p2135_p0, %p626_p2  ;;  %s657_s4 = sshll.u32 %s2738_s27, 4  ;;  %s658_s4 = int_to_ptr.vmem [resolvable:$true] %s657_s4 }
  0x23   : > { %s668_s9 = sshll.u32 %s2739_s28, 4  ;;  %s3446_s23 = sld [smem:[#allocation36_spill]]  ;;  %s2937_s9 = int_to_ptr.vmem [resolvable:$true] %s668_s9 }
  0x24   : > { %s3445_s8 = scalar_select %p2921_p3, 1, 0 }
  0x25   : > { %p2381_p5 = pneg %p2921_p3  ;;  %s3448_s24 = sld [smem:[#allocation37_spill]] }
  0x26   : > { %s3449_s13 = sld [smem:[#allocation27_spill]] }
  0x27   : > { %p2933_p6 = pnand %p2381_p5, %p2916_p1 }
  0x29   : > { %s718_s26 = sshll.u32 %s3446_s23, 4  ;;  %p2952_p8 = pneg %p2933_p6  ;;  %s2939_s26 = int_to_ptr.vmem [resolvable:$true] %s718_s26 }
  0x2c   : > { %s2526_s19 = scalar_lea.hbm %s3449_s13, 16 }
  0x2d   : > { %p2527_p7 = scmp.ne.s32.totalorder %s3449_s13, %s2526_s19  ;;  %p2533_p11 = scmp.lt.u32.totalorder %s2526_s19, %s3449_s13 }
  0x2f   : > { %p2529_p9 = pnand %p2952_p8, %p2527_p7 }
  0x31   : > { %p2530_p10 = pneg %p2529_p9 }
  0x33   : > { %p2535_p12 = pnand %p2533_p11, %p2530_p10 }
  0x35   : > { %2538 = shalt.err (!%p2535_p12)
}
  0x36   : > { %s2539_s20 = scalar_lea.vmem %s658_s4, 16  ;;  %s2546_s27 = scalar_lea.vmem %s658_s4, 32 }
  0x37   : > { %p2540_p13 = scmp.ne.s32.totalorder %s658_s4, %s2539_s20  ;;  %p2547_p5 = scmp.lt.s32.totalorder %s658_s4, %s658_s4 }
  0x38   : > { %p2548_p4 = scmp.lt.s32.totalorder %s2546_s27, %s2539_s20 }
  0x39   : > { %p2542_p0 = pnand %p2540_p13, %p2952_p8 }
  0x3a   : > { %p2549_p3 = por %p2548_p4, %p2547_p5 }
  0x3b   : > { %p2543_p2 = pneg %p2542_p0 }
  0x3d   : > { %p2550_p1 = pnand %p2549_p3, %p2543_p2 }
  0x3f   : > { %2553 = shalt.err (!%p2550_p1)
}
  0x40   : > { %2384 = dma.hbm_to_vmem [thread:$0]  (!%p2933_p6), %s3449_s13, 16, %s658_s4, [#allocation7]  }
  0x41   : > { %s3451_s0 = sld [smem:[#allocation28_spill]] }
  0x47   : > { %s2554_s22 = scalar_lea.hbm %s3451_s0, 16 }
  0x48   : > { %p2555_p7 = scmp.ne.s32.totalorder %s3451_s0, %s2554_s22  ;;  %p2561_p1 = scmp.lt.u32.totalorder %s2554_s22, %s3451_s0 }
  0x4a   : > { %p2557_p9 = pnand %p2555_p7, %p2952_p8 }
  0x4c   : > { %p2558_p4 = pneg %p2557_p9 }
  0x4e   : > { %p2563_p3 = pnand %p2561_p1, %p2558_p4 }
  0x50   : > { %2566 = shalt.err (!%p2563_p3)
}
  0x51   : > { %s2567_s4 = scalar_lea.vmem %s2937_s9, 16  ;;  %s2574_s17 = scalar_lea.vmem %s2937_s9, 32 }
  0x52   : > { %p2568_p10 = scmp.ne.s32.totalorder %s2937_s9, %s2567_s4  ;;  %p2575_p13 = scmp.lt.s32.totalorder %s2937_s9, %s2937_s9 }
  0x53   : > { %p2576_p0 = scmp.lt.s32.totalorder %s2574_s17, %s2567_s4 }
  0x54   : > { %p2570_p11 = pnand %p2568_p10, %p2952_p8 }
  0x55   : > { %p2577_p2 = por %p2576_p0, %p2575_p13 }
  0x56   : > { %p2571_p12 = pneg %p2570_p11 }
  0x58   : > { %p2578_p5 = pnand %p2577_p2, %p2571_p12 }
  0x5a   : > { %2581 = shalt.err (!%p2578_p5)
}
  0x5b   : > { %2387 = dma.hbm_to_vmem [thread:$0]  (!%p2933_p6), %s3451_s0, 16, %s2937_s9, [#allocation7]  }
  0x5c   : > { %s2582_s5 = scalar_lea.vmem %s2939_s26, 16  ;;  %p2590_p1 = scmp.lt.s32.totalorder %s2939_s26, %s2939_s26 }
  0x5d   : > { %p2583_p7 = scmp.ne.s32.totalorder %s2939_s26, %s2582_s5  ;;  %p2591_p3 = scmp.lt.s32.totalorder %s2582_s5, %s2582_s5 }
  0x5f   : > { %p2585_p9 = pnand %p2583_p7, %p2952_p8  ;;  %p2592_p10 = por %p2591_p3, %p2590_p1 }
  0x61   : > { %p2586_p4 = pneg %p2585_p9 }
  0x63   : > { %p2593_p11 = pnand %p2592_p10, %p2586_p4 }
  0x65   : > { %2596 = shalt.err (!%p2593_p11)
}
  0x66   : > { %s2740_s18 = smov [#allocation9]   ;;  %s3452_s9 = sshll.u32 %s3448_s24, 4  ;;  %s730_s9 = int_to_ptr.vmem [resolvable:$true] %s3452_s9 }
  0x67   : > { %2390 = dma.vmem_to_smem (!%p2933_p6), %s2939_s26, 16, %s2740_s18, [#allocation5]  }
  0x68   : > { %s2597_s20 = scalar_lea.vmem %s730_s9, 16  ;;  %p2605_p2 = scmp.lt.s32.totalorder %s730_s9, %s730_s9 }
  0x69   : > { %p2598_p12 = scmp.ne.s32.totalorder %s730_s9, %s2597_s20  ;;  %p2606_p5 = scmp.lt.s32.totalorder %s2597_s20, %s2597_s20 }
  0x6b   : > { %p2600_p13 = pnand %p2598_p12, %p2952_p8  ;;  %p2607_p7 = por %p2606_p5, %p2605_p2 }
  0x6d   : > { %p2601_p0 = pneg %p2600_p13 }
  0x6f   : > { %p2608_p9 = pnand %p2607_p7, %p2601_p0 }
  0x71   : > { %2611 = shalt.err (!%p2608_p9)
}
  0x72   : > { %s2741_s27 = smov [#allocation10]   ;;  %s2134_s23 = sadd.s32 4294967294, %s2736_s3  }
  0x73   : > { %2393 = dma.vmem_to_smem (!%p2933_p6), %s730_s9, 16, %s2741_s27, [#allocation11]  }
  0x74   : > { %s56_s26 = sadd.s32 1, %s2732_s7  ;;  %s91_s4 = sadd.s32 1, %s2724_s6 }
  0x75   : > { %p58_p8 = scmp.ge.s32.totalorder %s56_s26, 2  ;;  %p98_p4 = scmp.ne.s32.totalorder %s2724_s6, %s2720_s2 }
  0x76   : > { %p99_p1 = scmp.eq.s32.totalorder %s2736_s3, 0  ;;  %p104_p10 = scmp.ne.s32.totalorder %s2720_s2, %s2716_s29 }
  0x77   : > { %s3489_s26 = smov (%p58_p8, %s56_s26), 0  ;;  %s3455_s21 = sadd.s32 4294967295, %s2736_s3  }
  0x78   : > { %3453 = sst [smem:[#allocation18_spill]] %s3489_s26  ;;  %p3017_p3 = por %p99_p1, %p98_p4 }
  0x79   : > { %s88_s17 = ssub.s32 %s2732_s7, %s3489_s26  ;;  %p613_p6 = scmp.eq.s32.totalorder %s3455_s21, 1 }
  0x7a   : > { %p89_p11 = scmp.eq.s32.totalorder %s88_s17, 0  ;;  %p3456_p12 = scmp.ne.s32.totalorder %s3444_s1, 0 }
  0x7b   : > { %p3033_p0 = por %p613_p6, %p98_p4  ;;  %p619_p2 = scmp.eq.s32.totalorder %s2134_s23, 1 }
  0x7c   : > { %p3029_p13 = por %p3456_p12, %p104_p10  ;;  %p2406_p7 = scmp.lt.s32.totalorder %s2736_s3, 2 }
  0x7d   : > { %s3458_s5 = scalar_select %p3033_p0, 1, 0 }
  0x7e   : > { %s3038_s18 = scalar_select %p89_p11, %s2724_s6, %s91_s4  }
  0x7f   : > { %p3040_p5 = por %p619_p2, %p104_p10  ;;  %s750_s22 = sand.u32 1, %s2724_s6  }
  0x80   : > { %s2142_s9 = sshll.u32 %s2732_s7, 6  ;;  %s2141_s20 = sshll.u32 %s750_s22, 2 }
  0x81   : > { %s3459_s19 = scalar_select %p3040_p5, 1, 0 }
  0x82   : > { %s3460_s21 = sld [smem:[#allocation20_spill]]  ;;  %s754_s23 = scalar_lea.vmem [#allocation2], %s2141_s20 }
  0x83   : > { %s761_s4 = sshll.u32 %s754_s23, 4  ;;  %p3054_p9 = pnand %p2406_p7, %p3017_p3  ;;  %s3058_s4 = int_to_ptr.vmem [resolvable:$true] %s761_s4 }
  0x84   : > { %s751_s24 = scalar_lea.sflag [#allocation3], %s750_s22 }
  0x85   : > { %p2614_p4 = pneg %p3054_p9 }
  0x88   : > { %s3050_s0 = scalar_lea.hbm %s3460_s21, %s2142_s9  ;;  %s2617_s25 = scalar_lea.hbm %s3460_s21, 128 }
  0x89   : > { %s2612_s26 = scalar_lea.hbm %s3050_s0, 64  ;;  %p2618_p3 = scmp.lt.u32.totalorder %s3050_s0, %s3460_s21 }
  0x8a   : > { %p2613_p8 = scmp.ne.s32.totalorder %s3050_s0, %s2612_s26  ;;  %p2619_p6 = scmp.lt.u32.totalorder %s2617_s25, %s2612_s26 }
  0x8b   : > { %p2621_p12 = scmp.lt.u32.totalorder %s2612_s26, %s3050_s0 }
  0x8c   : > { %p2615_p1 = pnand %p2614_p4, %p2613_p8  ;;  %p2620_p11 = por %p2619_p6, %p2618_p3 }
  0x8e   : > { %p2616_p10 = pneg %p2615_p1  ;;  %p2622_p2 = por %p2621_p12, %p2620_p11 }
  0x90   : > { %p2623_p7 = pnand %p2622_p2, %p2616_p10 }
  0x92   : > { %2626 = shalt.err (!%p2623_p7)
}
  0x93   : > { %s2627_s22 = scalar_lea.vmem %s3058_s4, 64  ;;  %s2742_s23 = smov [#allocation2]  }
  0x94   : > { %p2628_p8 = scmp.ne.s32.totalorder %s3058_s4, %s2627_s22  ;;  %s2632_s9 = sshll.u32 %s2742_s23, 4  ;;  %s2633_s9 = int_to_ptr.vmem [resolvable:$false] %s2632_s9 }
  0x95   : > { %s2634_s20 = scalar_lea.vmem %s2633_s9, 128  ;;  %p2635_p0 = scmp.lt.s32.totalorder %s3058_s4, %s2633_s9 }
  0x96   : > { %p2630_p1 = pnand %p2628_p8, %p2614_p4  ;;  %p2636_p3 = scmp.lt.s32.totalorder %s2634_s20, %s2627_s22 }
  0x98   : > { %p2631_p5 = pneg %p2630_p1  ;;  %p2637_p6 = por %p2636_p3, %p2635_p0 }
  0x9a   : > { %p2638_p11 = pnand %p2637_p6, %p2631_p5 }
  0x9c   : > { %2641 = shalt.err (!%p2638_p11)
}
  0x9d   : > { %2397 = dma.hbm_to_vmem [thread:$0]  (!%p3054_p9), %s3050_s0, 64, %s3058_s4, %s751_s24  }
  0x9e   : > { %p3462_p10 = scmp.ne.s32.totalorder %s3445_s8, 0 }
  0x9f   : > { %s3088_s26 = sand.u32 (!%p3462_p10), 1, %s2720_s2  }
  0xa0   : > { %770 = sbr.rel (%p3462_p10) target bundleno = 3150 (0xc4e), region = 120  ;;  %s2144_s25 = sshll.u32 (!%p3462_p10), %s3088_s26, 2 }
  0xa1   : > { %s773_s27 = scalar_lea.sflag (!%p3462_p10), [#allocation3], %s3088_s26  ;;  %s3092_s17 = scalar_lea.vmem (!%p3462_p10), [#allocation2], %s2144_s25 }
  0xa7   : > { %2695 = dma.done.wait (%p3029_p13), %s773_s27, 64  }
  0xa8   : > { %2697 = vsyncadd (%p3029_p13), %s773_s27, 4294967232  ;;  %p3463_p0 = scmp.ne.s32.totalorder %s3444_s1, 0 }
  0xaa   : > { %2699 = dma.done.wait (%p3463_p0), [#allocation7], 32  }
  0xab   : > { %2701 = vsyncadd (%p3463_p0), [#allocation7], 4294967264 }
  0xac   : > { %2703 = dma.done.wait (%p3463_p0), [#allocation5], 16  }
  0xad   : > { %2705 = vsyncadd (%p3463_p0), [#allocation5], 4294967280 }
  0xae   : > { %2707 = dma.done.wait (%p3463_p0), [#allocation11], 16  }
  0xaf   : > { %2709 = vsyncadd (%p3463_p0), [#allocation11], 4294967280 }
  0xb0   : > { %797 = sfence }
  0xb1   : > { %s3464_s8 = sld [smem:[#allocation21_spill]]  ;;  %v2743_v1 = vmov 0.0   ;;  %vm2744_vm0 = vmmov 0   ;;  %p867_p13 = scmp.lt.s32.totalorder %s2728_s30, 1  ;;  %vm905_vm1 = vcmask 261120   ;;  %vm1089_vm2 = vcmask 64512  }
  0xb2   : > { %2253 = vmatprep.subr.bf16.mxu0 %v2743_v1  ;;  %2277 = vmatprep.subr.bf16.mxu1 %v2743_v1  ;;  %s3465_s9 = sld [smem:[#allocation22_spill]]  ;;  %s3466_s27 = sld [smem:[#allocation19_spill]]  ;;  %v876_v7 = vld [vmem:[%s3092_s17] sm:$0xf]  ;;  %v1079_v34 = vlaneseq  ;;  %v2162_v47 = vld [vmem:[#allocation6] ss:$0 sm:$0xff] }
  0xb3   : > { %2257 = vmatprep.mubr.msk.bf16.mxu0 %vm2744_vm0, %v2743_v1  ;;  %2279 = vmatprep.mubr.msk.bf16.mxu1 %vm2744_vm0, %v2743_v1  ;;  %s868_s1 = scalar_select %p867_p13, %s2728_s30, 1  ;;  %vm1158_vm5 = vcmask 1043456   ;;  %vm1566_vm9 = vcmask 130048   ;;  %vm1568_vm10 = vcmask 195584  }
  0xb4   : > { %s3468_s20 = sld [smem:[#allocation25_spill]]  ;;  %s2745_s17 = smov 112   ;;  %v1080_v36 = vshrl.u32 %v1079_v34, 7  ;;  %v1084_v37 = vand.u32 127, %v1079_v34 }
  0xb5   : > { %s2150_s4 = sshll.u32 %s868_s1, 3  ;;  %s2746_s25 = smov 120  }
  0xb6   : > { %s3469_s0 = sld [smem:[#allocation23_spill]]  ;;  %vm1085_vm3 = vcmp.gt.s32.totalorder %v1084_v37, %v1080_v36  ;;  %s2169_s23 = sld [smem:[#allocation10 + $0x1]] }
  0xb7   : > { %v2472_v0 = vld [vmem:[%s3464_s8] sm:$0xff]   ;;  %v2473_v2 = vld [vmem:[%s3464_s8 + $0x8] sm:$0xff]   ;;  %s1138_s22 = sld [smem:[#allocation10]]  ;;  %s2748_s24 = smov 8  }
  0xb8   : > { %2254 = vmatpush3.bf16.msra.mxu0 %v2472_v0  ;;  %v2474_v3 = vld [vmem:[%s3465_s9] sm:$0xff]   ;;  %s873_s13 = scalar_lea.vmem %s3466_s27, %s2150_s4  ;;  %v2475_v6 = vld [vmem:[%s3465_s9 + $0x8] sm:$0xff]   ;;  %s3467_s4 = sld [smem:[#allocation26_spill]] }
  0xb9   : > { %2255 = vmatprep.subr.bf16.mxu0 %v2743_v1  ;;  %v3132_v4 = vld [vmem:[%s873_s13] sm:$0xff]  ;;  %s2747_s27 = smov 104   ;;  %s2175_s13 = sld [smem:[#allocation10 + $0x3]] }
  0xba   : > { %v881_v5 = vpack.c.bf16 %v3132_v4, %v3132_v4  ;;  %v2154_v13 = vld [vmem:[%s3468_s20] ss:$0 sm:$0xff]  ;;  %s2172_s20 = sld [smem:[#allocation10 + $0x2]]  ;;  %p3479_p9 = scmp.ne.s32.totalorder %s3458_s5, 0 }
  0xbb   : > { %s3475_s28 = sld [smem:[#allocation33_spill]] }
  0xbc   : > { %2256 = vmatpush3.bf16.msra.mxu0 %v2473_v2  ;;  %v2476_v23 = vld [vmem:[%s3469_s0] sm:$0xff]   ;;  %v2477_v24 = vld [vmem:[%s3469_s0 + $0x8] sm:$0xff]   ;;  %v1256_v56 = vstv %s2169_s23  ;;  %s2151_s23 = sld [smem:[#allocation9 + $0x1]] }
  0xbd   : > { %2261 = vmatprep.subr.bf16.mxu0 %v2743_v1  ;;  %v1139_v39 = vstv %s1138_s22  ;;  %s2750_s22 = smov 24  }
  0xbe   : > { %v2158_v12 = vld [vmem:[%s3467_s4] ss:$0 sm:$0xff]  ;;  %s877_s4 = sld [smem:[#allocation9]] }
  0xbf   : > { %2258 = vmatmul.mubr.msk.bf16.vlgmr.msra.gmra.mrb[0].mxu0 %vm905_vm1, %v881_v5 }
  0xc0   : > { %2262 = vmatpush3.bf16.msra.mxu0 %v2474_v3  ;;  %2265 = vmatprep.mubr.msk.bf16.mxu0 %vm2744_vm0, %v2743_v1  ;;  %v1373_v2 = vstv %s2172_s20 }
  0xc1   : > { %2263 = vmatprep.subr.bf16.mxu0 %v2743_v1 }
  0xc2   : > { %s1685_s20 = ssub.f32 1.0, %s2151_s23 }
  0xc4   : > { %2264 = vmatpush3.bf16.msra.mxu0 %v2475_v6  ;;  %v1136_v35 = vstv %s877_s4  ;;  %s2749_s4 = smov 16  }
  0xc5   : > { %2269 = vmatprep.subr.bf16.mxu0 %v2743_v1 }
  0xc7   : > { %2266 = vmatmul.mubr.msk.bf16.vlgmr.msra.gmra.mrb[4].mxu0 %vm905_vm1, %v876_v7 }
  0xc8   : > { %2273 = vmatprep.mubr.msk.bf16.mxu0 %vm2744_vm0, %v2743_v1  ;;  %2270 = vmatpush3.bf16.msra.mxu0 %v2476_v23 }
  0xc9   : > { %2271 = vmatprep.subr.bf16.mxu0 %v2743_v1 }
  0xcc   : > { %2272 = vmatpush3.bf16.msra.mxu0 %v2477_v24 }
  0xcd   : > { %2283 = vmatprep.subr.bf16.mxu0 %v2743_v1 }
  0xcf   : > { %2274 = vmatmul.mubr.msk.bf16.vlgmr.msra.gmra.mrb[8].mxu0 %vm905_vm1, %v876_v7 }
  0xd0   : > { %2285 = vmatprep.mubr.msk.bf16.mxu0 %vm2744_vm0, %v2743_v1 }
 0x192   : > { %v943_v8 = vpop.f32.mrb[0].mxu0 }
 0x193   : > { %v2259_v9 = vpop.f32.mrb[1].mxu0  ;;  %v944_v18 = vadd.f32 %v2154_v13, %v943_v8 }
 0x194   : > { %v946_v10 = vpop.f32.mrb[2].mxu0 }
 0x195   : > { %v2260_v11 = vpop.f32.mrb[3].mxu0  ;;  %v1086_v22 = vpack.c.bf16 %v944_v18, %v944_v18 }
 0x19a   : > { %v1009_v14 = vpop.f32.mrb[4].mxu0 }
 0x19b   : > { %v1010_v15 = vadd.f32 %v2158_v12, %v1009_v14  ;;  %v2267_v16 = vpop.f32.mrb[5].mxu0  ;;  %v1489_v12 = vstv %s2175_s13  ;;  %s3471_s13 = sld [smem:[#allocation30_spill]] }
 0x19c   : > { %v1012_v17 = vpop.f32.mrb[6].mxu0 }
 0x19d   : > { %v1087_v19 = vpack.c.bf16 %v1010_v15, %v1010_v15  ;;  %v2268_v20 = vpop.f32.mrb[7].mxu0 }
 0x19f   : > { %1323 = vrot.lane.b32.xlu1 %v1087_v19, %s2745_s17  ;;  %1206 = vrot.lane.b32.xlu0 %v1087_v19, %s2746_s25  ;;  %v1094_v21 = vsel %vm1089_vm2, %v1087_v19, 0 }
 0x1a0   : > { %2278 = vmatpush3.bf16.xpose.msra.mxu1 %v1094_v21 }
 0x1a1   : > { %2289 = vmatprep.subr.bf16.mxu1 %v2743_v1 }
 0x1a2   : > { %v1072_v48 = vpop.f32.mrb[8].mxu0 }
 0x1a3   : > { %1321 = vrot.lane.b32.xlu1 %v1086_v22, %s2745_s17  ;;  %1203 = vrot.lane.b32.xlu0 %v1086_v22, %s2746_s25  ;;  %v1073_v49 = vadd.f32 %v2162_v47, %v1072_v48  ;;  %v2275_v50 = vpop.f32.mrb[9].mxu0 }
 0x1a4   : > { %v1075_v51 = vpop.f32.mrb[10].mxu0 }
 0x1a5   : > { %v3193_v52 = vpack.c.bf16 %v1073_v49, %v1073_v49  ;;  %v2276_v53 = vpop.f32.mrb[11].mxu0 }
 0x1a7   : > { %1437 = vrot.lane.b32.xlu1 %v1086_v22, %s2747_s27  ;;  %1439 = vrot.lane.b32.xlu0 %v1087_v19, %s2747_s27  ;;  %v1160_v54 = vsel %vm1158_vm5, %v3193_v52, 0 }
 0x1a8   : > { %2280 = vmatmul.mubr.msk.bf16.vlgmr.msra.gmra.mrb[0].mxu1 %vm1089_vm2, %v1086_v22  ;;  %2284 = vmatpush3.bf16.msra.mxu0 %v1160_v54 }
 0x1a9   : > { %2291 = vmatprep.mubr.msk.bf16.mxu1 %vm2744_vm0, %v2743_v1  ;;  %2295 = vmatprep.subr.bf16.mxu0 %v2743_v1 }
 0x211   : > { %v1207_v25 = vpop.permute.xlu0 %1206  ;;  %v1324_v27 = vpop.permute.xlu1 %1323 }
 0x212   : > { %v1212_v26 = vsel %vm1089_vm2, %v1207_v25, 0  ;;  %v1329_v29 = vsel %vm1089_vm2, %v1324_v27, 0 }
 0x213   : > { %2290 = vmatpush3.bf16.xpose.msra.mxu1 %v1212_v26 }
 0x214   : > { %2301 = vmatprep.subr.bf16.mxu1 %v2743_v1 }
 0x215   : > { %v1204_v28 = vpop.permute.xlu0 %1203  ;;  %v1322_v31 = vpop.permute.xlu1 %1321 }
 0x219   : > { %v1440_v30 = vpop.permute.xlu0 %1439  ;;  %v1438_v33 = vpop.permute.xlu1 %1437 }
 0x21a   : > { %2292 = vmatmul.mubr.msk.bf16.vlgmr.msra.gmra.mrb[4].mxu1 %vm1089_vm2, %v1204_v28  ;;  %v1445_v32 = vsel %vm1089_vm2, %v1440_v30, 0 }
 0x21b   : > { %2302 = vmatpush3.bf16.xpose.msra.mxu1 %v1329_v29  ;;  %2303 = vmatprep.mubr.msk.bf16.mxu1 %vm2744_vm0, %v2743_v1 }
 0x21c   : > { %2313 = vmatprep.subr.bf16.mxu1 %v2743_v1 }
 0x222   : > { %2304 = vmatmul.mubr.msk.bf16.vlgmr.msra.gmra.mrb[8].mxu1 %vm1089_vm2, %v1322_v31 }
 0x223   : > { %2314 = vmatpush3.bf16.xpose.msra.mxu1 %v1445_v32  ;;  %2315 = vmatprep.mubr.msk.bf16.mxu1 %vm2744_vm0, %v2743_v1 }
 0x224   : > { %2325 = vmatprep.subr.bf16.mxu1 %v2743_v1 }
 0x22a   : > { %2316 = vmatmul.mubr.msk.bf16.vlgmr.msra.gmra.mrb[12].mxu1 %vm1089_vm2, %v1438_v33 }
 0x22b   : > { %2329 = vmatprep.mubr.msk.bf16.mxu1 %vm2744_vm0, %v2743_v1 }
 0x27b   : > { %v1130_v38 = vpop.f32.mrb[0].mxu1 }
 0x27c   : > { %v1137_v40 = vmul.f32 %v1136_v35, %v1130_v38  ;;  %v2281_v41 = vpop.f32.mrb[1].mxu1 }
 0x27d   : > { %v1133_v42 = vpop.f32.mrb[2].mxu1 }
 0x27e   : > { %vm1140_vm4 = vcmp.lt.f32.partialorder %v1137_v40, %v1139_v39  ;;  %v2282_v43 = vpop.f32.mrb[3].mxu1 }
 0x27f   : > { %v1141_v44 = vsel %vm1140_vm4, -10000.0, %v1137_v40 }
 0x280   : > { %v1142_v45 = vsel %vm1085_vm3, -1e+30, %v1141_v44 }
 0x281   : > { %v1143_v46 = vsel %vm1089_vm2, %v1142_v45, -inf }
 0x282   : > { %1144 = vmax.xlane.f32.xlu0 %v1143_v46 }
 0x2ed   : > { %v1248_v55 = vpop.f32.mrb[4].mxu1 }
 0x2ee   : > { %v1254_v57 = vmul.f32 %v1248_v55, %v1136_v35  ;;  %v2293_v58 = vpop.f32.mrb[5].mxu1 }
 0x2ef   : > { %v1251_v59 = vpop.f32.mrb[6].mxu1 }
 0x2f0   : > { %vm1257_vm6 = vcmp.lt.f32.partialorder %v1254_v57, %v1256_v56  ;;  %v2294_v60 = vpop.f32.mrb[7].mxu1 }
 0x2f1   : > { %v1258_v61 = vsel %vm1257_vm6, -10000.0, %v1254_v57 }
 0x2f2   : > { %v1259_v62 = vsel %vm1085_vm3, -1e+30, %v1258_v61 }
 0x2f3   : > { %v1260_v63 = vsel %vm1089_vm2, %v1259_v62, -inf }
 0x2f4   : > { %1261 = vmax.xlane.f32.xlu1 %v1260_v63 }
 0x2f5   : > { %v1365_v0 = vpop.f32.mrb[8].mxu1 }
 0x2f6   : > { %v1371_v3 = vmul.f32 %v1365_v0, %v1136_v35  ;;  %v2305_v5 = vpop.f32.mrb[9].mxu1 }
 0x2f7   : > { %v1368_v6 = vpop.f32.mrb[10].mxu1 }
 0x2f8   : > { %vm1374_vm7 = vcmp.lt.f32.partialorder %v1371_v3, %v1373_v2  ;;  %v2306_v7 = vpop.f32.mrb[11].mxu1 }
 0x2f9   : > { %v1375_v8 = vsel %vm1374_vm7, -10000.0, %v1371_v3 }
 0x2fa   : > { %v1376_v9 = vsel %vm1085_vm3, -1e+30, %v1375_v8 }
 0x2fb   : > { %v1377_v10 = vsel %vm1089_vm2, %v1376_v9, -inf }
 0x2fc   : > { %1378 = vmax.xlane.f32.xlu0 %v1377_v10 }
 0x2fd   : > { %v1481_v11 = vpop.f32.mrb[12].mxu1 }
 0x2fe   : > { %v1487_v13 = vmul.f32 %v1481_v11, %v1136_v35  ;;  %v2317_v14 = vpop.f32.mrb[13].mxu1 }
 0x2ff   : > { %v1484_v15 = vpop.f32.mrb[14].mxu1 }
 0x300   : > { %vm1490_vm8 = vcmp.lt.f32.partialorder %v1487_v13, %v1489_v12  ;;  %v2318_v16 = vpop.f32.mrb[15].mxu1 }
 0x301   : > { %v1491_v17 = vsel %vm1490_vm8, -10000.0, %v1487_v13 }
 0x302   : > { %v1492_v18 = vsel %vm1085_vm3, -1e+30, %v1491_v17 }
 0x303   : > { %v1493_v19 = vsel %vm1089_vm2, %v1492_v18, -inf }
 0x304   : > { %1494 = vmax.xlane.f32.xlu0 %v1493_v19 }
 0x30f   : > { %v1145_v20 = vpop.xlane.xlu0 %1144 }
 0x310   : > { %v1146_v21 = vsub.f32 %v1142_v45, %v1145_v20 }
 0x312   : > { %v1147_v22 = vmul.f32 1.442695, %v1146_v21 }
 0x314   : > { %2490 = vpow2.f32 %v1147_v22 }
 0x31e   : > { %v2491_v23 = vpop.eup %2490 }
 0x31f   : > { %v1149_v24 = vsel %vm1089_vm2, %v2491_v23, 0.0 }
 0x320   : > { %1150 = vadd.xlane.f32.xlu1 %v1149_v24 }
 0x331   : > { %1273 = vrot.lane.b32.xlu1 %v3193_v52, %s2746_s25 }
 0x381   : > { %v1262_v25 = vpop.xlane.xlu1 %1261 }
 0x382   : > { %v1263_v26 = vsub.f32 %v1259_v62, %v1262_v25  ;;  %v2177_v25 = vld [vmem:[#allocation8] ss:$0 sm:$0xff] }
 0x384   : > { %v1264_v27 = vmul.f32 1.442695, %v1263_v26 }
 0x386   : > { %2492 = vpow2.f32 %v1264_v27 }
 0x389   : > { %v1379_v28 = vpop.xlane.xlu0 %1378 }
 0x38a   : > { %v1380_v29 = vsub.f32 %v1376_v9, %v1379_v28 }
 0x38c   : > { %v1381_v30 = vmul.f32 1.442695, %v1380_v29 }
 0x38e   : > { %2494 = vpow2.f32 %v1381_v30 }
 0x390   : > { %v2493_v31 = vpop.eup %2492 }
 0x391   : > { %v1495_v32 = vpop.xlane.xlu0 %1494  ;;  %v1266_v33 = vsel %vm1089_vm2, %v2493_v31, 0.0 }
 0x392   : > { %v1496_v34 = vsub.f32 %v1492_v18, %v1495_v32  ;;  %1267 = vadd.xlane.f32.xlu0 %v1266_v33 }
 0x394   : > { %v1497_v35 = vmul.f32 1.442695, %v1496_v34 }
 0x396   : > { %2496 = vpow2.f32 %v1497_v35 }
 0x398   : > { %v2495_v36 = vpop.eup %2494 }
 0x399   : > { %v1383_v37 = vsel %vm1089_vm2, %v2495_v36, 0.0 }
 0x39a   : > { %1384 = vadd.xlane.f32.xlu1 %v1383_v37  ;;  %v2480_v37 = vld [vmem:[%s3391_s10] sm:$0xff]  }
 0x3a0   : > { %v2497_v38 = vpop.eup %2496 }
 0x3a1   : > { %v1499_v39 = vsel %vm1089_vm2, %v2497_v38, 0.0 }
 0x3a2   : > { %1500 = vadd.xlane.f32.xlu0 %v1499_v39 }
 0x3ab   : > { %1505 = vrot.lane.b32.xlu1 %v3193_v52, %s2747_s27  ;;  %s3470_s27 = sld [smem:[#allocation24_spill]] }
 0x3ad   : > { %v1151_v40 = vpop.xlane.xlu1 %1150 }
 0x3ae   : > { %2498 = vrcp.f32 %v1151_v40 }
 0x3b1   : > { %v1274_v42 = vpop.permute.xlu1 %1273  ;;  %v2478_v3 = vld [vmem:[%s3470_s27] sm:$0xff]   ;;  %v2479_v9 = vld [vmem:[%s3470_s27 + $0x8] sm:$0xff]  }
 0x3b2   : > { %v1279_v45 = vsel %vm1158_vm5, %v1274_v42, 0  ;;  %2326 = vmatpush3.bf16.msra.mxu1 %v2478_v3 }
 0x3b3   : > { %2327 = vmatprep.subr.bf16.mxu1 %v2743_v1 }
 0x3b6   : > { %2328 = vmatpush3.bf16.msra.mxu1 %v2479_v9 }
 0x3b7   : > { %2341 = vmatprep.subr.bf16.mxu1 %v2743_v1 }
 0x3b8   : > { %v2499_v41 = vpop.eup %2498  ;;  %1389 = vrot.lane.b32.xlu0 %v3193_v52, %s2745_s17  ;;  %s3474_s17 = sld [smem:[#allocation29_spill]] }
 0x3b9   : > { %v1153_v43 = vmul.f32 %v2499_v41, %v2491_v23 }
 0x3bb   : > { %v1154_v44 = vpack.c.bf16 %v1153_v43, %v1153_v43  ;;  %v2181_v43 = vld [vmem:[%s3395_s14] ss:$0 sm:$0xff] }
 0x3bd   : > { %2286 = vmatmul.mubr.msk.bf16.vlgmr.msra.gmra.mrb[12].mxu0 %vm1089_vm2, %v1154_v44 }
 0x3be   : > { %2296 = vmatpush3.bf16.msra.mxu0 %v1279_v45  ;;  %2297 = vmatprep.mubr.msk.bf16.mxu0 %vm2744_vm0, %v2743_v1  ;;  %v2182_v45 = vld [vmem:[%s3396_s15] ss:$0 sm:$0xff] }
 0x3bf   : > { %2307 = vmatprep.subr.bf16.mxu0 %v2743_v1 }
 0x41f   : > { %v1268_v46 = vpop.xlane.xlu0 %1267 }
 0x420   : > { %2500 = vrcp.f32 %v1268_v46 }
 0x427   : > { %v1385_v47 = vpop.xlane.xlu1 %1384 }
 0x428   : > { %2502 = vrcp.f32 %v1385_v47 }
 0x42a   : > { %v2501_v48 = vpop.eup %2500 }
 0x42b   : > { %v1270_v49 = vmul.f32 %v2501_v48, %v2493_v31  ;;  %v1506_v56 = vpop.permute.xlu1 %1505  ;;  %v2183_v48 = vld [vmem:[%s3397_s16] ss:$0 sm:$0xff] }
 0x42c   : > { %v1511_v58 = vsel %vm1158_vm5, %v1506_v56, 0  ;;  %v1683_v56 = vstv %s2151_s23 }
 0x42d   : > { %v1271_v50 = vpack.c.bf16 %v1270_v49, %v1270_v49 }
 0x42f   : > { %v1501_v51 = vpop.xlane.xlu0 %1500  ;;  %2298 = vmatmul.mubr.msk.bf16.vlgmr.msra.gmra.mrb[16].mxu0 %vm1089_vm2, %v1271_v50 }
 0x430   : > { %2504 = vrcp.f32 %v1501_v51  ;;  %2309 = vmatprep.mubr.msk.bf16.mxu0 %vm2744_vm0, %v2743_v1 }
 0x432   : > { %v2503_v52 = vpop.eup %2502 }
 0x433   : > { %v1387_v53 = vmul.f32 %v2503_v52, %v2495_v36  ;;  %v1390_v54 = vpop.permute.xlu0 %1389 }
 0x434   : > { %v1395_v55 = vsel %vm1158_vm5, %v1390_v54, 0 }
 0x435   : > { %2308 = vmatpush3.bf16.msra.mxu0 %v1395_v55  ;;  %v1388_v57 = vpack.c.bf16 %v1387_v53, %v1387_v53  ;;  %v1686_v55 = vstv %s1685_s20  ;;  %s3478_s20 = sld [smem:[#allocation38_spill]] }
 0x436   : > { %2319 = vmatprep.subr.bf16.mxu0 %v2743_v1 }
 0x438   : > { %2310 = vmatmul.mubr.msk.bf16.vlgmr.msra.gmra.mrb[20].mxu0 %vm1089_vm2, %v1388_v57 }
 0x439   : > { %2320 = vmatpush3.bf16.msra.mxu0 %v1511_v58  ;;  %2321 = vmatprep.mubr.msk.bf16.mxu0 %vm2744_vm0, %v2743_v1 }
 0x43a   : > { %v2505_v59 = vpop.eup %2504  ;;  %2333 = vmatprep.subr.bf16.mxu0 %v2743_v1 }
 0x43b   : > { %v1503_v60 = vmul.f32 %v2505_v59, %v2497_v38  ;;  %v2481_v38 = vld [vmem:[%s3391_s10 + $0x8] sm:$0xff]  }
 0x43d   : > { %v1504_v61 = vpack.c.bf16 %v1503_v60, %v1503_v60 }
 0x440   : > { %2322 = vmatmul.mubr.msk.bf16.vlgmr.msra.gmra.mrb[24].mxu0 %vm1089_vm2, %v1504_v61 }
 0x441   : > { %2337 = vmatprep.mubr.msk.bf16.mxu0 %vm2744_vm0, %v2743_v1  ;;  %2334 = vmatpush3.bf16.msra.mxu0 %v2480_v37 }
 0x442   : > { %2335 = vmatprep.subr.bf16.mxu0 %v2743_v1 }
 0x445   : > { %2336 = vmatpush3.bf16.msra.mxu0 %v2481_v38 }
 0x490   : > { %v1196_v62 = vpop.f32.mrb[12].mxu0 }
 0x491   : > { %v2287_v63 = vpop.f32.mrb[13].mxu0 }
 0x492   : > { %v1199_v0 = vpop.f32.mrb[14].mxu0 }
 0x493   : > { %v2288_v2 = vpop.f32.mrb[15].mxu0  ;;  %v2186_v0 = vld [vmem:[%s3392_s11] ss:$0 sm:$0xff] }
 0x502   : > { %v1315_v5 = vpop.f32.mrb[16].mxu0 }
 0x503   : > { %1554 = vrot.lane.b32.xlu1 %v1315_v5, %s2748_s24  ;;  %v2299_v6 = vpop.f32.mrb[17].mxu0  ;;  %s3472_s24 = sld [smem:[#allocation31_spill]] }
 0x504   : > { %v1318_v7 = vpop.f32.mrb[18].mxu0 }
 0x505   : > { %v2300_v8 = vpop.f32.mrb[19].mxu0 }
 0x50b   : > { %v1431_v10 = vpop.f32.mrb[20].mxu0 }
 0x50c   : > { %1558 = vrot.lane.b32.xlu0 %v1431_v10, %s2749_s4  ;;  %v2311_v11 = vpop.f32.mrb[21].mxu0  ;;  %s3473_s4 = sld [smem:[#allocation32_spill]] }
 0x50d   : > { %v1434_v12 = vpop.f32.mrb[22].mxu0  ;;  %v2482_v11 = vld [vmem:[%s3393_s12] sm:$0xff]  }
 0x50e   : > { %v2312_v13 = vpop.f32.mrb[23].mxu0  ;;  %v2483_v12 = vld [vmem:[%s3393_s12 + $0x8] sm:$0xff]  }
 0x50f   : > { %v2484_v13 = vld [vmem:[%s3393_s12 + $0x10] sm:$0xff]  }
 0x513   : > { %v1547_v14 = vpop.f32.mrb[24].mxu0 }
 0x514   : > { %1562 = vrot.lane.b32.xlu1 %v1547_v14, %s2750_s22  ;;  %v2323_v15 = vpop.f32.mrb[25].mxu0  ;;  %v2485_v14 = vld [vmem:[%s3393_s12 + $0x18] sm:$0xff]   ;;  %s2153_s22 = sld [smem:[#allocation9 + $0x3]] }
 0x515   : > { %v1550_v16 = vpop.f32.mrb[26].mxu0  ;;  %v2486_v15 = vld [vmem:[%s3393_s12 + $0x20] sm:$0xff]  }
 0x516   : > { %v2324_v17 = vpop.f32.mrb[27].mxu0  ;;  %v2487_v16 = vld [vmem:[%s3393_s12 + $0x28] sm:$0xff]  }
 0x517   : > { %v2488_v17 = vld [vmem:[%s3393_s12 + $0x30] sm:$0xff]  }
 0x51a   : > { %s1805_s23 = ssub.f32 1.0, %s2153_s22 }
 0x575   : > { %v1555_v18 = vpop.permute.xlu1 %1554 }
 0x576   : > { %v1565_v20 = vsel %vm1089_vm2, %v1196_v62, %v1555_v18  ;;  %v2489_v18 = vld [vmem:[%s3393_s12 + $0x38] sm:$0xff]  }
 0x57e   : > { %v1559_v19 = vpop.permute.xlu0 %1558 }
 0x57f   : > { %v1567_v21 = vsel %vm1566_vm9, %v1565_v20, %v1559_v19 }
 0x586   : > { %v1563_v22 = vpop.permute.xlu1 %1562 }
 0x587   : > { %v1569_v23 = vsel %vm1568_vm10, %v1567_v21, %v1563_v22 }
 0x588   : > { %v1570_v24 = vpack.c.bf16 %v1569_v23, %v1569_v23  ;;  %v2190_v23 = vld [vmem:[%s3471_s13] ss:$0 sm:$0xff]  ;;  %s3477_s13 = sld [smem:[#allocation35_spill]] }
 0x58a   : > { %2330 = vmatmul.mubr.msk.bf16.vlgmr.msra.gmra.mrb[16].mxu1 %vm905_vm1, %v1570_v24 }
 0x58b   : > { %2357 = vmatprep.mubr.msk.bf16.mxu1 %vm2744_vm0, %v2743_v1  ;;  %2342 = vmatpush3.bf16.msra.mxu1 %v2482_v11 }
 0x58c   : > { %2343 = vmatprep.subr.bf16.mxu1 %v2743_v1 }
 0x58f   : > { %2344 = vmatpush3.bf16.msra.mxu1 %v2483_v12 }
 0x590   : > { %2345 = vmatprep.subr.bf16.mxu1 %v2743_v1 }
 0x593   : > { %2346 = vmatpush3.bf16.msra.mxu1 %v2484_v13 }
 0x594   : > { %2347 = vmatprep.subr.bf16.mxu1 %v2743_v1 }
 0x597   : > { %2348 = vmatpush3.bf16.msra.mxu1 %v2485_v14 }
 0x598   : > { %2349 = vmatprep.subr.bf16.mxu1 %v2743_v1 }
 0x59b   : > { %2350 = vmatpush3.bf16.msra.mxu1 %v2486_v15 }
 0x59c   : > { %2351 = vmatprep.subr.bf16.mxu1 %v2743_v1 }
 0x59f   : > { %2352 = vmatpush3.bf16.msra.mxu1 %v2487_v16 }
 0x5a0   : > { %2353 = vmatprep.subr.bf16.mxu1 %v2743_v1 }
 0x5a3   : > { %2354 = vmatpush3.bf16.msra.mxu1 %v2488_v17 }
 0x5a4   : > { %2355 = vmatprep.subr.bf16.mxu1 %v2743_v1  ;;  %v2192_v1 = vld [vmem:[%s3473_s4] ss:$0 sm:$0xff] }
 0x5a7   : > { %2356 = vmatpush3.bf16.msra.mxu1 %v2489_v18 }
 0x65d   : > { %v1631_v26 = vpop.f32.mrb[16].mxu1 }
 0x65e   : > { %v1632_v27 = vadd.f32 %v2177_v25, %v1631_v26  ;;  %v2331_v28 = vpop.f32.mrb[17].mxu1  ;;  %v2191_v25 = vld [vmem:[%s3472_s24] ss:$0 sm:$0xff]  ;;  %s2149_s24 = sshll.u32 %s3088_s26, 3 }
 0x65f   : > { %v1634_v29 = vpop.f32.mrb[18].mxu1  ;;  %s866_s1 = scalar_lea.vmem [#allocation12], %s2149_s24 }
 0x660   : > { %v2332_v30 = vpop.f32.mrb[19].mxu1  ;;  %v1640_v31 = vsel %vm905_vm1, %v1632_v27, 0.0  ;;  %v1687_v58 = vmul.f32 %v1686_v55, %v1632_v27  ;;  %s1998_s4 = sshll.u32 %s866_s1, 4  ;;  %s3333_s4 = int_to_ptr.vmem [resolvable:$true] %s1998_s4 }
 0x661   : > { %1641 = vadd.xlane.f32.xlu0 %v1640_v31 }
 0x6ee   : > { %v1642_v32 = vpop.xlane.xlu0 %1641 }
 0x6ef   : > { %v1644_v33 = vmul.f32 0.03125, %v1642_v32 }
 0x6f1   : > { %v1645_v34 = vsub.f32 %v1632_v27, %v1644_v33 }
 0x6f3   : > { %v1646_v35 = vmul.f32 %v1645_v34, %v1645_v34 }
 0x6f5   : > { %v1647_v36 = vsel %vm905_vm1, %v1646_v35, 0.0  ;;  %v1803_v35 = vstv %s2153_s22  ;;  %s3476_s22 = sld [smem:[#allocation34_spill]] }
 0x6f6   : > { %1648 = vadd.xlane.f32.xlu1 %v1647_v36 }
 0x783   : > { %v1649_v39 = vpop.xlane.xlu1 %1648 }
 0x784   : > { %v1650_v40 = vmul.f32 0.03125, %v1649_v39 }
 0x786   : > { %v1651_v41 = vadd.f32 1e-05, %v1650_v40 }
 0x788   : > { %2506 = vrsqrt.f32 %v1651_v41 }
 0x792   : > { %v2507_v42 = vpop.eup %2506 }
 0x793   : > { %v1653_v44 = vmul.f32 %v2507_v42, %v1645_v34  ;;  %v1806_v34 = vstv %s1805_s23 }
 0x795   : > { %v1660_v46 = vmul.f32 %v2181_v43, %v1653_v44 }
 0x797   : > { %v1667_v47 = vadd.f32 %v2182_v45, %v1660_v46 }
 0x799   : > { %v1668_v49 = vand.u32 2147483647, %v1667_v47  ;;  %v2195_v47 = vld [vmem:[%s3474_s17] ss:$0 sm:$0xff]  ;;  %s2152_s17 = sld [smem:[#allocation9 + $0x2]] }
 0x79b   : > { %v1675_v50 = vsub.f32 %v1668_v49, %v2183_v48 }
 0x79d   : > { %v2184_v51 = vmul.f32 -1.442695, %v1675_v50 }
 0x79f   : > { %2508 = vpow2.f32 %v2184_v51  ;;  %s1975_s25 = ssub.f32 1.0, %s2152_s17  ;;  %v1973_v14 = vstv %s2152_s17  ;;  %s1984_s17 = scalar_lea.sflag [#allocation4], %s3088_s26 }
 0x7a1   : > { %v1976_v13 = vstv %s1975_s25  ;;  %s2642_s25 = scalar_lea.vmem %s3333_s4, 128 }
 0x7a2   : > { %p2643_p5 = scmp.ne.s32.totalorder %s3333_s4, %s2642_s25 }
 0x7a4   : > { %p2644_p4 = pnand %p2643_p5, %p3479_p9 }
 0x7a6   : > { %p2645_p12 = pneg %p2644_p4 }
 0x7a9   : > { %v2509_v52 = vpop.eup %2508 }
 0x7aa   : > { %v1679_v53 = vadd.f32 1.0, %v2509_v52 }
 0x7ac   : > { %2510 = vrcp.f32 %v1679_v53 }
 0x7b6   : > { %v2511_v54 = vpop.eup %2510 }
 0x7b7   : > { %v1682_v57 = vmul.f32 %v2511_v54, %v1632_v27 }
 0x7b9   : > { %v1684_v59 = vmul.f32 %v1683_v56, %v1682_v57 }
 0x7bb   : > { %v1688_v60 = vadd.f32 %v1687_v58, %v1684_v59 }
 0x7bd   : > { %v2185_v61 = vclamps-f32 %v1688_v60, 100.0 }
 0x7bf   : > { %v3263_v62 = vadd.f32 %v2185_v61, %v3132_v4 }
 0x7c1   : > { %v1692_v63 = vpack.c.bf16 %v3263_v62, %v3263_v62 }
 0x7c3   : > { %2338 = vmatmul.mubr.msk.bf16.vlgmr.msra.gmra.mrb[28].mxu0 %vm905_vm1, %v1692_v63 }
 0x896   : > { %v1753_v2 = vpop.f32.mrb[28].mxu0 }
 0x897   : > { %v1754_v3 = vadd.f32 %v2186_v0, %v1753_v2  ;;  %v2339_v5 = vpop.f32.mrb[29].mxu0  ;;  %v2204_v0 = vld [vmem:[%s3475_s28] ss:$0 sm:$0xff]  ;;  %s2210_s28 = sshll.u32 %s2728_s30, 7  ;;  %s2751_s30 = smov [#allocation12]  }
 0x898   : > { %v1756_v6 = vpop.f32.mrb[30].mxu0  ;;  %s2646_s24 = sshll.u32 %s2751_s30, 4  ;;  %s2647_s24 = int_to_ptr.vmem [resolvable:$false] %s2646_s24 }
 0x899   : > { %1762 = vadd.xlane.f32.xlu0 %v1754_v3  ;;  %v2340_v7 = vpop.f32.mrb[31].mxu0  ;;  %v1807_v37 = vmul.f32 %v1806_v34, %v1754_v3  ;;  %s2648_s0 = scalar_lea.vmem %s2647_s24, 256  ;;  %p2649_p2 = scmp.lt.s32.totalorder %s3333_s4, %s2647_s24 }
 0x89a   : > { %v2206_v7 = vld [vmem:[%s3477_s13] ss:$0 sm:$0xff]  ;;  %s3331_s13 = scalar_lea.hbm %s3478_s20, %s2210_s28  ;;  %p2650_p7 = scmp.lt.s32.totalorder %s2648_s0, %s2642_s25 }
 0x89c   : > { %p2651_p8 = por %p2650_p7, %p2649_p2 }
 0x89e   : > { %p2652_p1 = pnand %p2651_p8, %p2645_p12 }
 0x926   : > { %v1763_v8 = vpop.xlane.xlu0 %1762 }
 0x927   : > { %v1765_v9 = vmul.f32 0.0078125, %v1763_v8 }
 0x929   : > { %v1766_v10 = vsub.f32 %v1754_v3, %v1765_v9 }
 0x92b   : > { %v1767_v4 = vmul.f32 %v1766_v10, %v1766_v10 }
 0x92d   : > { %1768 = vadd.xlane.f32.xlu0 %v1767_v4 }
 0x9ba   : > { %v1769_v19 = vpop.xlane.xlu0 %1768 }
 0x9bb   : > { %v1770_v20 = vmul.f32 0.0078125, %v1769_v19 }
 0x9bd   : > { %v1771_v21 = vadd.f32 1e-05, %v1770_v20 }
 0x9bf   : > { %2512 = vrsqrt.f32 %v1771_v21 }
 0x9c9   : > { %v2513_v22 = vpop.eup %2512 }
 0x9ca   : > { %v1773_v24 = vmul.f32 %v2513_v22, %v1766_v10 }
 0x9cc   : > { %v1780_v26 = vmul.f32 %v2190_v23, %v1773_v24 }
 0x9ce   : > { %v1787_v27 = vadd.f32 %v2191_v25, %v1780_v26 }
 0x9d0   : > { %v1788_v28 = vand.u32 2147483647, %v1787_v27 }
 0x9d2   : > { %v1795_v29 = vsub.f32 %v1788_v28, %v2192_v1 }
 0x9d4   : > { %v2193_v30 = vmul.f32 -1.442695, %v1795_v29 }
 0x9d6   : > { %2514 = vpow2.f32 %v2193_v30 }
 0x9e0   : > { %v2515_v31 = vpop.eup %2514 }
 0x9e1   : > { %v1799_v32 = vadd.f32 1.0, %v2515_v31 }
 0x9e3   : > { %2516 = vrcp.f32 %v1799_v32 }
 0x9ed   : > { %v2517_v33 = vpop.eup %2516 }
 0x9ee   : > { %v1802_v36 = vmul.f32 %v2517_v33, %v1754_v3  ;;  %v2205_v3 = vld [vmem:[%s3476_s22] ss:$0 sm:$0xff] }
 0x9f0   : > { %v1804_v38 = vmul.f32 %v1803_v35, %v1802_v36 }
 0x9f2   : > { %v1808_v39 = vadd.f32 %v1807_v37, %v1804_v38 }
 0x9f4   : > { %v2194_v40 = vclamps-f32 %v1808_v39, 100.0 }
 0x9f6   : > { %v1812_v41 = vmul.f32 0.70710677, %v2194_v40  ;;  %v1811_v43 = vmul.f32 0.5, %v2194_v40 }
 0x9f8   : > { %2518 = verf.f32 %v1812_v41 }
 0xa02   : > { %v2519_v42 = vpop.eup %2518 }
 0xa03   : > { %v1814_v44 = vadd.f32 1.0, %v2519_v42 }
 0xa05   : > { %v1815_v45 = vmul.f32 %v1814_v44, %v1811_v43 }
 0xa07   : > { %v1816_v46 = vpack.c.bf16 %v1815_v45, %v1815_v45 }
 0xa09   : > { %2358 = vmatmul.mubr.bf16.vlgmr.msra.gmra.mrb[20].mxu1 %v1816_v46 }
 0xadc   : > { %v1922_v48 = vpop.f32.mrb[20].mxu1 }
 0xadd   : > { %v1923_v49 = vadd.f32 %v2195_v47, %v1922_v48  ;;  %v2359_v50 = vpop.f32.mrb[21].mxu1 }
 0xade   : > { %v1925_v51 = vpop.f32.mrb[22].mxu1 }
 0xadf   : > { %v2360_v52 = vpop.f32.mrb[23].mxu1  ;;  %v1931_v53 = vsel %vm905_vm1, %v1923_v49, 0.0  ;;  %v1977_v16 = vmul.f32 %v1976_v13, %v1923_v49 }
 0xae0   : > { %1932 = vadd.xlane.f32.xlu1 %v1931_v53 }
 0xb6d   : > { %v1933_v54 = vpop.xlane.xlu1 %1932 }
 0xb6e   : > { %v1934_v55 = vmul.f32 0.03125, %v1933_v54 }
 0xb70   : > { %v1935_v56 = vsub.f32 %v1923_v49, %v1934_v55 }
 0xb72   : > { %v1936_v57 = vmul.f32 %v1935_v56, %v1935_v56 }
 0xb74   : > { %v1937_v58 = vsel %vm905_vm1, %v1936_v57, 0.0 }
 0xb75   : > { %1938 = vadd.xlane.f32.xlu0 %v1937_v58 }
 0xc02   : > { %v1939_v59 = vpop.xlane.xlu0 %1938 }
 0xc03   : > { %v1940_v60 = vmul.f32 0.03125, %v1939_v59 }
 0xc05   : > { %v1941_v61 = vadd.f32 1e-05, %v1940_v60 }
 0xc07   : > { %2520 = vrsqrt.f32 %v1941_v61 }
 0xc11   : > { %v2521_v63 = vpop.eup %2520 }
 0xc12   : > { %v1943_v2 = vmul.f32 %v2521_v63, %v1935_v56 }
 0xc14   : > { %v1950_v5 = vmul.f32 %v2204_v0, %v1943_v2 }
 0xc16   : > { %v1957_v6 = vadd.f32 %v2205_v3, %v1950_v5 }
 0xc18   : > { %v1958_v8 = vand.u32 2147483647, %v1957_v6 }
 0xc1a   : > { %v1965_v9 = vsub.f32 %v1958_v8, %v2206_v7 }
 0xc1c   : > { %v2207_v10 = vmul.f32 -1.442695, %v1965_v9 }
 0xc1e   : > { %2522 = vpow2.f32 %v2207_v10 }
 0xc28   : > { %v2523_v4 = vpop.eup %2522 }
 0xc29   : > { %v1969_v11 = vadd.f32 1.0, %v2523_v4 }
 0xc2b   : > { %2524 = vrcp.f32 %v1969_v11 }
 0xc35   : > { %v2525_v12 = vpop.eup %2524 }
 0xc36   : > { %v1972_v15 = vmul.f32 %v2525_v12, %v1923_v49 }
 0xc38   : > { %v1974_v17 = vmul.f32 %v1973_v14, %v1972_v15 }
 0xc3a   : > { %v1978_v18 = vadd.f32 %v1977_v16, %v1974_v17 }
 0xc3c   : > { %v2208_v19 = vclamps-f32 %v1978_v18, 100.0 }
 0xc3e   : > { %v1981_v20 = vadd.f32 %v2208_v19, %v3263_v62 }
 0xc40   : > { %1982 = vst.msk [vmem:[%s866_s1] sm:$0xff] %vm905_vm1, %v1981_v20 }
 0xc41   : > { %2655 = shalt.err (!%p2652_p1)
}
 0xc42   : > { %s2656_s26 = scalar_lea.hbm %s3331_s13, 128  ;;  %s2660_s22 = scalar_lea.hbm %s3478_s20, 256 }
 0xc43   : > { %p2657_p3 = scmp.ne.s32.totalorder %s3331_s13, %s2656_s26  ;;  %p2661_p10 = scmp.lt.u32.totalorder %s3331_s13, %s3478_s20 }
 0xc44   : > { %p2662_p0 = scmp.lt.u32.totalorder %s2660_s22, %s2656_s26  ;;  %p2664_p5 = scmp.lt.u32.totalorder %s2656_s26, %s3331_s13 }
 0xc45   : > { %p2658_p6 = pnand %p2657_p3, %p3479_p9 }
 0xc46   : > { %p2663_p13 = por %p2662_p0, %p2661_p10 }
 0xc47   : > { %p2659_p11 = pneg %p2658_p6 }
 0xc48   : > { %p2665_p4 = por %p2664_p5, %p2663_p13 }
 0xc4a   : > { %p2666_p12 = pnand %p2665_p4, %p2659_p11 }
 0xc4c   : > { %2669 = shalt.err (!%p2666_p12)
}
 0xc4d   : > { %2379 = dma.vmem_to_hbm [thread:$0]  (%p3479_p9), %s3333_s4, 128, %s3331_s13, %s1984_s17  }
 0xc4e PF: > { %s2010_s0 = sand.u32 1, %s2716_s29   ;;  %p3480_p2 = scmp.ne.s32.totalorder %s3459_s19, 0 }
 0xc4f   : > { %p3481_p7 = scmp.ge.s32.totalorder %s2736_s3, 2  ;;  %s2011_s25 = scalar_lea.sflag [#allocation4], %s2010_s0 }
 0xc51   : > { %p2399_p8 = pnand %p3481_p7, %p3480_p2 }
 0xc53   : > { %2711 = dma.done.wait (!%p2399_p8), %s2011_s25, 128  }
 0xc54   : > { %2713 = vsyncadd (!%p2399_p8), %s2011_s25, 4294967168  ;;  %s44_s3 = sadd.s32 1, %s2736_s3   ;;  %s3482_s5 = sld [smem:[#allocation18_spill]] }
 0xc55   : > { %p41_p1 = scmp.ge.s32.totalorder %s44_s3, 4   ;;  %s3483_s29 = smov %s2720_s2 }
 0xc56   : > { %s3484_s2 = smov %s2724_s6  ;;  %s3485_s6 = smov %s3038_s18 }
 0xc57   : > { %s3486_s30 = smov %s2732_s7  ;;  %43 = sbr.rel (!%p41_p1) target bundleno = 30 (0x1e), region = 185 }
 0xc5a   : > { %s3487_s7 = smov %s3482_s5 }
 0xc5e   :  { %2016 = vsyncpa [#allocation3], 1 }
 0xc5f   :  { %2018 = vsyncpa [#allocation3 + $0x1], 1 }
 0xc60   :  { %2019 = vsyncpa [#allocation7], 1 }
 0xc61   :  { %2020 = vsyncpa [#allocation4], 1 }
 0xc62   :  { %2022 = vsyncpa [#allocation4 + $0x1], 1 }
 0xc63   :  { %2023 = vsyncpa [#allocation5], 1 }
 0xc64   :  { %2025 = vsyncpa [#allocation5 + $0x1], 1 }
 0xc65   :  { %2026 = vsyncpa [#allocation11], 1 }

</bundles_post_ra>
